<compile_context>
chip_gen: v7x
topology: tpu7x:2x2x1
jax: 0.10.0
libtpu: 0.0.40
codegen_flags: <defaults>
</compile_context>

<pallas_src>
import functools

import jax
import jax.numpy as jnp
from jax import lax
from jax.experimental import pallas as pl
from jax.experimental.pallas import tpu as pltpu

# Set to jnp.bfloat16 on v6e/v7x to run the large NON-recurrent matmuls
# (input projections, attention score, fc) on the bf16 MXU with f32 accumulate.
# Kept f32 by default so the toy-size check matches the f32 reference tightly,
# and elementwise gate math always stays f32 (v5e has no bf16 VPU/EUP).
MATMUL_DTYPE = jnp.float32


def _mm(a, b):
    """MXU matmul with optional bf16 operands, f32 accumulation."""
    return jnp.dot(a.astype(MATMUL_DTYPE), b.astype(MATMUL_DTYPE),
                   preferred_element_type=jnp.float32)


# ----------------------------------------------------------------------------
# Fused kernel: all LSTM layers + attention + fc + log_softmax for one batch
# tile.  Internal activations are time-major (T, Bt, feature).
# ----------------------------------------------------------------------------
def _fused_kernel(x_ref, *refs, num_layers, hidden):
    Hh = hidden
    nlw = 4 * num_layers
    layer_refs = refs[:nlw]
    watt_ref, fcw_ref, fcb_ref, out_ref = refs[nlw:nlw + 4]
    gxf_s, gxb_s, hf_s, hb_s = refs[nlw + 4:]

    T, Bt, _ = x_ref.shape
    x_in = x_ref[...]                                        # (T, Bt, in_0)

    for l in range(num_layers):
        wih_fc = layer_refs[4 * l][...]                      # (in_l, 8*Hh) fwd cols
        wih_bc = layer_refs[4 * l + 1][...]                  # (in_l, 8*Hh) bwd cols
        whh = layer_refs[4 * l + 2][...]                     # (2*Hh, 8*Hh)
        bias = layer_refs[4 * l + 3][...]                    # (1,    8*Hh)

        # Hoisted input projections: two big matmuls (outside the recurrence)
        # give every timestep's gate inputs for BOTH directions.  The backward
        # projection is read at time T-1-t inside the loop, so no time-reversed
        # input copy is ever materialized.
        in_l = x_in.shape[-1]
        x2d = x_in.reshape(T * Bt, in_l)
        gxf_s[...] = (_mm(x2d, wih_fc) + bias).reshape(T, Bt, 8 * Hh)
        gxb_s[...] = _mm(x2d, wih_bc).reshape(T, Bt, 8 * Hh)

        def step(t, carry):
            h_c, c_c = carry                                 # (Bt, 2*Hh) each
            # Single fused recurrence matmul for both directions (f32).
            g = (gxf_s[t] + gxb_s[T - 1 - t]
                 + jnp.dot(h_c, whh, preferred_element_type=jnp.float32))
            i = jax.nn.sigmoid(g[:, 0:2 * Hh])
            f = jax.nn.sigmoid(g[:, 2 * Hh:4 * Hh])
            gg = jnp.tanh(g[:, 4 * Hh:6 * Hh])
            o = jax.nn.sigmoid(g[:, 6 * Hh:8 * Hh])
            c_new = f * c_c + i * gg
            h_new = o * jnp.tanh(c_new)
            # Time-aligned per-direction slab stores (bulk, no interleaved
            # masked stores into a 2*Hh-wide output row).
            hf_s[t] = h_new[:, :Hh]                          # fwd hidden, time t
            hb_s[T - 1 - t] = h_new[:, Hh:]                  # bwd hidden, time T-1-t
            return h_new, c_new

        h0 = jnp.zeros((Bt, 2 * Hh), jnp.float32)
        c0 = jnp.zeros((Bt, 2 * Hh), jnp.float32)
        lax.fori_loop(0, T, step, (h0, c0),
                      unroll=True if T <= 32 else 4)

        if l + 1 < num_layers:
            # Next layer's (time-aligned) input is simply H = [h_f | h_b].
            x_in = jnp.concatenate([hf_s[...], hb_s[...]], axis=-1)

    # ---- attention + classifier head (fused, everything stays in VMEM) ----
    H = jnp.concatenate([hf_s[...], hb_s[...]], axis=-1)     # (T, Bt, 2*Hh)
    M = jnp.tanh(H)
    scores = _mm(M.reshape(T * Bt, 2 * Hh), watt_ref[...])   # (T*Bt, 1) via MXU
    scores = scores.reshape(T, Bt, 1)
    scores = scores - jnp.max(scores, axis=0, keepdims=True)  # softmax over T
    e = jnp.exp(scores)
    alpha = e / jnp.sum(e, axis=0, keepdims=True)             # (T, Bt, 1)
    ctx = jnp.sum(H * alpha, axis=0)                          # (Bt, 2*Hh)
    ctx = jnp.maximum(ctx, 0.0)                               # relu
    logits = _mm(ctx, fcw_ref[...]) + fcb_ref[...]            # (Bt, C)
    m = jnp.max(logits, axis=1, keepdims=True)
    z = logits - m
    lse = jnp.log(jnp.sum(jnp.exp(z), axis=1, keepdims=True))
    # TODO(synk): C is tiny (4) so this store is lane-masked; pad C to 128 in
    # the wrapper if the class count grows.
    out_ref[...] = z - lse                                    # log_softmax


# ----------------------------------------------------------------------------
# Weight packing: per-gate interleaved columns [i_f|i_b|f_f|f_b|g_f|g_b|o_f|o_b].
# ----------------------------------------------------------------------------
def _interleave_gates(f_mat, b_mat, Hh):
    parts = []
    for k in range(4):
        parts.append(f_mat[..., k * Hh:(k + 1) * Hh])
        parts.append(b_mat[..., k * Hh:(k + 1) * Hh])
    return jnp.concatenate(parts, axis=-1)


def _pack_layer(lp, Hh):
    zi = jnp.zeros_like(lp["wih_f"])
    wih_fc = _interleave_gates(lp["wih_f"], zi, Hh)          # fwd gate columns
    wih_bc = _interleave_gates(zi, lp["wih_b"], Hh)          # bwd gate columns
    zh = jnp.zeros_like(lp["whh_f"])
    whh_c = jnp.concatenate([_interleave_gates(lp["whh_f"], zh, Hh),
                             _interleave_gates(zh, lp["whh_b"], Hh)], axis=0)
    b_c = _interleave_gates(lp["b_f"], lp["b_b"], Hh)
    return wih_fc, wih_bc, whh_c, b_c


def _batch_tile(B):
    for cand in (64, 32, 16, 8):
        if B % cand == 0:
            return cand
    return B  # full batch in one block (block == full dim, so always legal)


# ----------------------------------------------------------------------------
# Forward pass wrapper.
# ----------------------------------------------------------------------------
@jax.jit
def text_rnn_att_forward(x_tok, params):
    # TODO(synk): at production vocab sizes this gather could be a
    # scalar-prefetch DMA gather inside the kernel; jnp.take is fine here.
    emb = jnp.take(params["embedding"], x_tok, axis=0)        # (B, T, E)
    B, T, E = emb.shape
    Hh = params["lstm"][0]["whh_f"].shape[0]
    C = params["fc_w"].shape[1]
    L = len(params["lstm"])

    x_tm = jnp.transpose(emb, (1, 0, 2))                      # (T, B, E) time-major

    layer_args = []
    for lp in params["lstm"]:
        layer_args.extend(_pack_layer(lp, Hh))
    w_att = jnp.transpose(params["W_att"])                    # (2Hh, 1)

    Bt = _batch_tile(B)
    grid = (B // Bt,)

    in_specs = [pl.BlockSpec((T, Bt, E), lambda i: (0, i, 0))]
    for w in layer_args:                                      # resident weights
        in_specs.append(pl.BlockSpec(w.shape, lambda i: (0, 0)))
    for w in (w_att, params["fc_w"], params["fc_b"]):
        in_specs.append(pl.BlockSpec(w.shape, lambda i: (0, 0)))

    scratch = [pltpu.VMEM((T, Bt, 8 * Hh), jnp.float32),      # fwd gate inputs (+bias)
               pltpu.VMEM((T, Bt, 8 * Hh), jnp.float32),      # bwd gate inputs
               pltpu.VMEM((T, Bt, Hh), jnp.float32),          # fwd hidden (time-aligned)
               pltpu.VMEM((T, Bt, Hh), jnp.float32)]          # bwd hidden (time-aligned)

    kernel = functools.partial(_fused_kernel, num_layers=L, hidden=Hh)
    return pl.pallas_call(
        kernel,
        out_shape=jax.ShapeDtypeStruct((B, C), jnp.float32),
        grid_spec=pltpu.PrefetchScalarGridSpec(
            num_scalar_prefetch=0,
            grid=grid,
            in_specs=in_specs,
            out_specs=pl.BlockSpec((Bt, C), lambda i: (i, 0)),
            scratch_shapes=scratch),
        compiler_params=pltpu.CompilerParams(
            dimension_semantics=("parallel",)),
    )(x_tm, *layer_args, w_att, params["fc_w"], params["fc_b"])
    # TODO(synk): self.dropout is defined in the PyTorch __init__ but never
    # used in forward, so it is intentionally omitted.


# ----------------------------------------------------------------------------
# Parameter init + pure-JAX reference for verification.
# ----------------------------------------------------------------------------
def init_params(key, vocab_size, embed_size, hidden_size, num_layers, class_num):
    keys = jax.random.split(key, 3 + num_layers)
    params = {
        "embedding": 0.1 * jax.random.normal(keys[0], (vocab_size, embed_size),
                                             jnp.float32),
        "W_att": 0.1 * jax.random.normal(keys[1], (1, 2 * hidden_size),
                                         jnp.float32),
        "fc_w": 0.1 * jax.random.normal(keys[2], (2 * hidden_size, class_num),
                                        jnp.float32),
        "fc_b": jnp.zeros((1, class_num), jnp.float32),
        "lstm": [],
    }
    for l in range(num_layers):
        in_dim = embed_size if l == 0 else 2 * hidden_size
        lk = jax.random.split(keys[3 + l], 4)
        params["lstm"].append({
            "wih_f": 0.1 * jax.random.normal(lk[0], (in_dim, 4 * hidden_size),
                                             jnp.float32),
            "whh_f": 0.1 * jax.random.normal(lk[1], (hidden_size, 4 * hidden_size),
                                             jnp.float32),
            "b_f": jnp.zeros((1, 4 * hidden_size), jnp.float32),
            "wih_b": 0.1 * jax.random.normal(lk[2], (in_dim, 4 * hidden_size),
                                             jnp.float32),
            "whh_b": 0.1 * jax.random.normal(lk[3], (hidden_size, 4 * hidden_size),
                                             jnp.float32),
            "b_b": jnp.zeros((1, 4 * hidden_size), jnp.float32),
        })
    return params


def _ref_bilstm(x, lp):
    B, T, _ = x.shape
    Hh = lp["whh_f"].shape[0]

    def cell(x_t, h, c, wih, whh, b):
        g = x_t @ wih + h @ whh + b
        i = jax.nn.sigmoid(g[:, :Hh])
        f = jax.nn.sigmoid(g[:, Hh:2 * Hh])
        gg = jnp.tanh(g[:, 2 * Hh:3 * Hh])
        o = jax.nn.sigmoid(g[:, 3 * Hh:])
        c = f * c + i * gg
        return o * jnp.tanh(c), c

    hf = jnp.zeros((B, Hh)); cf = jnp.zeros((B, Hh))
    hb = jnp.zeros((B, Hh)); cb = jnp.zeros((B, Hh))
    fwd, bwd = [None] * T, [None] * T
    for t in range(T):
        hf, cf = cell(x[:, t], hf, cf, lp["wih_f"], lp["whh_f"], lp["b_f"])
        fwd[t] = hf
        tb = T - 1 - t
        hb, cb = cell(x[:, tb], hb, cb, lp["wih_b"], lp["whh_b"], lp["b_b"])
        bwd[tb] = hb
    return jnp.concatenate([jnp.stack(fwd, 1), jnp.stack(bwd, 1)], axis=-1)


def reference_forward(x_tok, params):
    h = jnp.take(params["embedding"], x_tok, axis=0)
    for lp in params["lstm"]:
        h = _ref_bilstm(h, lp)
    M = jnp.tanh(h)
    scores = jnp.einsum("btd,d->bt", M, params["W_att"][0])
    alpha = jax.nn.softmax(scores, axis=1)
    ctx = jax.nn.relu(jnp.sum(h * alpha[..., None], axis=1))
    logits = ctx @ params["fc_w"] + params["fc_b"]
    return jax.nn.log_softmax(logits, axis=1)


if __name__ == "__main__":
    vocab_size, embed_size, hidden_size, class_num = 50, 32, 32, 4
    B, T = 2, 8

    key = jax.random.PRNGKey(0)
    k_tok, k_par = jax.random.split(key)
    x_tok = jax.random.randint(k_tok, (B, T), 0, vocab_size, dtype=jnp.int32)

    for num_layers in (1, 2):
        params = init_params(k_par, vocab_size, embed_size, hidden_size,
                             num_layers, class_num)
        out = text_rnn_att_forward(x_tok, params)
        out = jax.block_until_ready(out)
        ref = reference_forward(x_tok, params)
        assert out.shape == (B, class_num)
        assert jnp.allclose(out, ref, rtol=1e-4, atol=5e-4), (num_layers, out, ref)

    print("KERNEL_OK")
</pallas_src>

<mosaic_0001>
module attributes {stable_mosaic.version = 11 : i64} {
  func.func @_fused_kernel(%arg0: i32, %arg1: memref<8x2x32xf32, #tpu.memory_space<vmem>>, %arg2: memref<32x256xf32, #tpu.memory_space<vmem>>, %arg3: memref<32x256xf32, #tpu.memory_space<vmem>>, %arg4: memref<64x256xf32, #tpu.memory_space<vmem>>, %arg5: memref<1x256xf32, #tpu.memory_space<vmem>>, %arg6: memref<64x1xf32, #tpu.memory_space<vmem>>, %arg7: memref<64x4xf32, #tpu.memory_space<vmem>>, %arg8: memref<1x4xf32, #tpu.memory_space<vmem>>, %arg9: memref<2x4xf32, #tpu.memory_space<vmem>>, %arg10: memref<8x2x256xf32, #tpu.memory_space<vmem>>, %arg11: memref<8x2x256xf32, #tpu.memory_space<vmem>>, %arg12: memref<8x2x32xf32, #tpu.memory_space<vmem>>, %arg13: memref<8x2x32xf32, #tpu.memory_space<vmem>>) attributes {dimension_semantics = [#tpu.dimension_semantics<parallel>], iteration_bounds = array<i64: 1>, scalar_prefetch = 0 : i64, scratch_operands = 4 : i64, tpu.core_type = #tpu.core_type<tc>, window_params = [{transform_indices = @transform_0, window_bounds = array<i64: 8, 2, 32>}, {pipeline_mode = #tpu.pipeline_mode<synchronous>, transform_indices = @transform_1, window_bounds = array<i64: 32, 256>}, {pipeline_mode = #tpu.pipeline_mode<synchronous>, transform_indices = @transform_2, window_bounds = array<i64: 32, 256>}, {pipeline_mode = #tpu.pipeline_mode<synchronous>, transform_indices = @transform_3, window_bounds = array<i64: 64, 256>}, {pipeline_mode = #tpu.pipeline_mode<synchronous>, transform_indices = @transform_4, window_bounds = array<i64: 1, 256>}, {pipeline_mode = #tpu.pipeline_mode<synchronous>, transform_indices = @transform_5, window_bounds = array<i64: 64, 1>}, {pipeline_mode = #tpu.pipeline_mode<synchronous>, transform_indices = @transform_6, window_bounds = array<i64: 64, 4>}, {pipeline_mode = #tpu.pipeline_mode<synchronous>, transform_indices = @transform_7, window_bounds = array<i64: 1, 4>}, {transform_indices = @transform_8, window_bounds = array<i64: 2, 4>}]} {
    %c0 = arith.constant 0 : index
    %c0_0 = arith.constant 0 : index
    %c0_1 = arith.constant 0 : index
    %0 = vector.load %arg1[%c0, %c0_0, %c0_1] : memref<8x2x32xf32, #tpu.memory_space<vmem>>, vector<8x2x32xf32>
    %c0_2 = arith.constant 0 : index
    %c0_3 = arith.constant 0 : index
    %1 = vector.load %arg2[%c0_2, %c0_3] : memref<32x256xf32, #tpu.memory_space<vmem>>, vector<32x256xf32>
    %c0_4 = arith.constant 0 : index
    %c0_5 = arith.constant 0 : index
    %2 = vector.load %arg3[%c0_4, %c0_5] : memref<32x256xf32, #tpu.memory_space<vmem>>, vector<32x256xf32>
    %c0_6 = arith.constant 0 : index
    %c0_7 = arith.constant 0 : index
    %3 = vector.load %arg4[%c0_6, %c0_7] : memref<64x256xf32, #tpu.memory_space<vmem>>, vector<64x256xf32>
    %c0_8 = arith.constant 0 : index
    %c0_9 = arith.constant 0 : index
    %4 = vector.load %arg5[%c0_8, %c0_9] : memref<1x256xf32, #tpu.memory_space<vmem>>, vector<1x256xf32>
    %5 = vector.shape_cast %0 : vector<8x2x32xf32> to vector<16x32xf32>
    %cst = arith.constant dense<0.000000e+00> : vector<16x256xf32>
    %6 = tpu.matmul %5, %1, %cst {dimension_numbers = #tpu.dot_dimension_numbers<[1], [0], [0], [1], [0, 0, 1, 1], [], []>} : vector<16x32xf32>, vector<32x256xf32>, vector<16x256xf32> -> vector<16x256xf32>
    %7 = vector.broadcast %4 : vector<1x256xf32> to vector<16x256xf32>
    %8 = arith.addf %6, %7 : vector<16x256xf32>
    %9 = vector.shape_cast %8 : vector<16x256xf32> to vector<8x2x256xf32>
    %c0_10 = arith.constant 0 : index
    %c0_11 = arith.constant 0 : index
    %c0_12 = arith.constant 0 : index
    %10 = vector.load %arg10[%c0_10, %c0_11, %c0_12] : memref<8x2x256xf32, #tpu.memory_space<vmem>>, vector<8x2x256xf32>
    tpu.vector_store %arg10[%c0_10, %c0_11, %c0_12], %9 {strides = array<i32>} : memref<8x2x256xf32, #tpu.memory_space<vmem>>, vector<8x2x256xf32>,
    %cst_13 = arith.constant dense<0.000000e+00> : vector<16x256xf32>
    %11 = tpu.matmul %5, %2, %cst_13 {dimension_numbers = #tpu.dot_dimension_numbers<[1], [0], [0], [1], [0, 0, 1, 1], [], []>} : vector<16x32xf32>, vector<32x256xf32>, vector<16x256xf32> -> vector<16x256xf32>
    %12 = vector.shape_cast %11 : vector<16x256xf32> to vector<8x2x256xf32>
    %c0_14 = arith.constant 0 : index
    %c0_15 = arith.constant 0 : index
    %c0_16 = arith.constant 0 : index
    %13 = vector.load %arg11[%c0_14, %c0_15, %c0_16] : memref<8x2x256xf32, #tpu.memory_space<vmem>>, vector<8x2x256xf32>
    tpu.vector_store %arg11[%c0_14, %c0_15, %c0_16], %12 {strides = array<i32>} : memref<8x2x256xf32, #tpu.memory_space<vmem>>, vector<8x2x256xf32>,
    %cst_17 = arith.constant 0.000000e+00 : f32
    %14 = vector.broadcast %cst_17 : f32 to vector<2x64xf32>
    %cst_18 = arith.constant 0.000000e+00 : f32
    %15 = vector.broadcast %cst_18 : f32 to vector<2x64xf32>
    %c0_i32 = arith.constant 0 : i32
    %16 = arith.index_cast %c0_i32 : i32 to index
    %c0_19 = arith.constant 0 : index
    %c0_20 = arith.constant 0 : index
    %17 = vector.load %arg10[%16, %c0_19, %c0_20] : memref<8x2x256xf32, #tpu.memory_space<vmem>>, vector<1x2x256xf32>
    %18 = vector.shape_cast %17 : vector<1x2x256xf32> to vector<2x256xf32>
    %c7_i32 = arith.constant 7 : i32
    %19 = arith.subi %c7_i32, %c0_i32 : i32
    %20 = arith.index_cast %19 : i32 to index
    %c0_21 = arith.constant 0 : index
    %c0_22 = arith.constant 0 : index
    %21 = vector.load %arg11[%20, %c0_21, %c0_22] : memref<8x2x256xf32, #tpu.memory_space<vmem>>, vector<1x2x256xf32>
    %22 = vector.shape_cast %21 : vector<1x2x256xf32> to vector<2x256xf32>
    %23 = arith.addf %18, %22 : vector<2x256xf32>
    %cst_23 = arith.constant dense<0.000000e+00> : vector<2x256xf32>
    %24 = tpu.matmul %14, %3, %cst_23 {dimension_numbers = #tpu.dot_dimension_numbers<[1], [0], [0], [1], [0, 0, 1, 1], [], []>} : vector<2x64xf32>, vector<64x256xf32>, vector<2x256xf32> -> vector<2x256xf32>
    %25 = arith.addf %23, %24 : vector<2x256xf32>
    %26 = vector.extract_strided_slice %25 {offsets = [0, 0], sizes = [2, 64], strides = [1, 1]} : vector<2x256xf32> to vector<2x64xf32>
    %27 = arith.negf %26 : vector<2x64xf32>
    %28 = math.exp %27 : vector<2x64xf32>
    %cst_24 = arith.constant 1.000000e+00 : f32
    %29 = vector.broadcast %cst_24 : f32 to vector<2x64xf32>
    %30 = arith.addf %29, %28 : vector<2x64xf32>
    %31 = arith.divf %29, %30 : vector<2x64xf32>
    %32 = vector.extract_strided_slice %25 {offsets = [0, 64], sizes = [2, 64], strides = [1, 1]} : vector<2x256xf32> to vector<2x64xf32>
    %33 = arith.negf %32 : vector<2x64xf32>
    %34 = math.exp %33 : vector<2x64xf32>
    %cst_25 = arith.constant 1.000000e+00 : f32
    %35 = vector.broadcast %cst_25 : f32 to vector<2x64xf32>
    %36 = arith.addf %35, %34 : vector<2x64xf32>
    %37 = arith.divf %35, %36 : vector<2x64xf32>
    %38 = vector.extract_strided_slice %25 {offsets = [0, 128], sizes = [2, 64], strides = [1, 1]} : vector<2x256xf32> to vector<2x64xf32>
    %39 = math.tanh %38 : vector<2x64xf32>
    %40 = vector.extract_strided_slice %25 {offsets = [0, 192], sizes = [2, 64], strides = [1, 1]} : vector<2x256xf32> to vector<2x64xf32>
    %41 = arith.negf %40 : vector<2x64xf32>
    %42 = math.exp %41 : vector<2x64xf32>
    %cst_26 = arith.constant 1.000000e+00 : f32
    %43 = vector.broadcast %cst_26 : f32 to vector<2x64xf32>
    %44 = arith.addf %43, %42 : vector<2x64xf32>
    %45 = arith.divf %43, %44 : vector<2x64xf32>
    %46 = arith.mulf %37, %15 : vector<2x64xf32>
    %47 = arith.mulf %31, %39 : vector<2x64xf32>
    %48 = arith.addf %46, %47 : vector<2x64xf32>
    %49 = math.tanh %48 : vector<2x64xf32>
    %50 = arith.mulf %45, %49 : vector<2x64xf32>
    %51 = vector.extract_strided_slice %50 {offsets = [0, 0], sizes = [2, 32], strides = [1, 1]} : vector<2x64xf32> to vector<2x32xf32>
    %52 = arith.index_cast %c0_i32 : i32 to index
    %c0_27 = arith.constant 0 : index
    %c0_28 = arith.constant 0 : index
    %53 = vector.load %arg12[%52, %c0_27, %c0_28] : memref<8x2x32xf32, #tpu.memory_space<vmem>>, vector<1x2x32xf32>
    %54 = vector.shape_cast %53 : vector<1x2x32xf32> to vector<2x32xf32>
    %55 = vector.shape_cast %51 : vector<2x32xf32> to vector<1x2x32xf32>
    tpu.vector_store %arg12[%52, %c0_27, %c0_28], %55 {strides = array<i32>} : memref<8x2x32xf32, #tpu.memory_space<vmem>>, vector<1x2x32xf32>,
    %56 = vector.extract_strided_slice %50 {offsets = [0, 32], sizes = [2, 32], strides = [1, 1]} : vector<2x64xf32> to vector<2x32xf32>
    %c7_i32_29 = arith.constant 7 : i32
    %57 = arith.subi %c7_i32_29, %c0_i32 : i32
    %58 = arith.index_cast %57 : i32 to index
    %c0_30 = arith.constant 0 : index
    %c0_31 = arith.constant 0 : index
    %59 = vector.load %arg13[%58, %c0_30, %c0_31] : memref<8x2x32xf32, #tpu.memory_space<vmem>>, vector<1x2x32xf32>
    %60 = vector.shape_cast %59 : vector<1x2x32xf32> to vector<2x32xf32>
    %61 = vector.shape_cast %56 : vector<2x32xf32> to vector<1x2x32xf32>
    tpu.vector_store %arg13[%58, %c0_30, %c0_31], %61 {strides = array<i32>} : memref<8x2x32xf32, #tpu.memory_space<vmem>>, vector<1x2x32xf32>,
    %c1_i32 = arith.constant 1 : i32
    %62 = arith.index_cast %c1_i32 : i32 to index
    %c0_32 = arith.constant 0 : index
    %c0_33 = arith.constant 0 : index
    %63 = vector.load %arg10[%62, %c0_32, %c0_33] : memref<8x2x256xf32, #tpu.memory_space<vmem>>, vector<1x2x256xf32>
    %64 = vector.shape_cast %63 : vector<1x2x256xf32> to vector<2x256xf32>
    %c7_i32_34 = arith.constant 7 : i32
    %65 = arith.subi %c7_i32_34, %c1_i32 : i32
    %66 = arith.index_cast %65 : i32 to index
    %c0_35 = arith.constant 0 : index
    %c0_36 = arith.constant 0 : index
    %67 = vector.load %arg11[%66, %c0_35, %c0_36] : memref<8x2x256xf32, #tpu.memory_space<vmem>>, vector<1x2x256xf32>
    %68 = vector.shape_cast %67 : vector<1x2x256xf32> to vector<2x256xf32>
    %69 = arith.addf %64, %68 : vector<2x256xf32>
    %cst_37 = arith.constant dense<0.000000e+00> : vector<2x256xf32>
    %70 = tpu.matmul %50, %3, %cst_37 {dimension_numbers = #tpu.dot_dimension_numbers<[1], [0], [0], [1], [0, 0, 1, 1], [], []>} : vector<2x64xf32>, vector<64x256xf32>, vector<2x256xf32> -> vector<2x256xf32>
    %71 = arith.addf %69, %70 : vector<2x256xf32>
    %72 = vector.extract_strided_slice %71 {offsets = [0, 0], sizes = [2, 64], strides = [1, 1]} : vector<2x256xf32> to vector<2x64xf32>
    %73 = arith.negf %72 : vector<2x64xf32>
    %74 = math.exp %73 : vector<2x64xf32>
    %cst_38 = arith.constant 1.000000e+00 : f32
    %75 = vector.broadcast %cst_38 : f32 to vector<2x64xf32>
    %76 = arith.addf %75, %74 : vector<2x64xf32>
    %77 = arith.divf %75, %76 : vector<2x64xf32>
    %78 = vector.extract_strided_slice %71 {offsets = [0, 64], sizes = [2, 64], strides = [1, 1]} : vector<2x256xf32> to vector<2x64xf32>
    %79 = arith.negf %78 : vector<2x64xf32>
    %80 = math.exp %79 : vector<2x64xf32>
    %cst_39 = arith.constant 1.000000e+00 : f32
    %81 = vector.broadcast %cst_39 : f32 to vector<2x64xf32>
    %82 = arith.addf %81, %80 : vector<2x64xf32>
    %83 = arith.divf %81, %82 : vector<2x64xf32>
    %84 = vector.extract_strided_slice %71 {offsets = [0, 128], sizes = [2, 64], strides = [1, 1]} : vector<2x256xf32> to vector<2x64xf32>
    %85 = math.tanh %84 : vector<2x64xf32>
    %86 = vector.extract_strided_slice %71 {offsets = [0, 192], sizes = [2, 64], strides = [1, 1]} : vector<2x256xf32> to vector<2x64xf32>
    %87 = arith.negf %86 : vector<2x64xf32>
    %88 = math.exp %87 : vector<2x64xf32>
    %cst_40 = arith.constant 1.000000e+00 : f32
    %89 = vector.broadcast %cst_40 : f32 to vector<2x64xf32>
    %90 = arith.addf %89, %88 : vector<2x64xf32>
    %91 = arith.divf %89, %90 : vector<2x64xf32>
    %92 = arith.mulf %83, %48 : vector<2x64xf32>
    %93 = arith.mulf %77, %85 : vector<2x64xf32>
    %94 = arith.addf %92, %93 : vector<2x64xf32>
    %95 = math.tanh %94 : vector<2x64xf32>
    %96 = arith.mulf %91, %95 : vector<2x64xf32>
    %97 = vector.extract_strided_slice %96 {offsets = [0, 0], sizes = [2, 32], strides = [1, 1]} : vector<2x64xf32> to vector<2x32xf32>
    %98 = arith.index_cast %c1_i32 : i32 to index
    %c0_41 = arith.constant 0 : index
    %c0_42 = arith.constant 0 : index
    %99 = vector.load %arg12[%98, %c0_41, %c0_42] : memref<8x2x32xf32, #tpu.memory_space<vmem>>, vector<1x2x32xf32>
    %100 = vector.shape_cast %99 : vector<1x2x32xf32> to vector<2x32xf32>
    %101 = vector.shape_cast %97 : vector<2x32xf32> to vector<1x2x32xf32>
    tpu.vector_store %arg12[%98, %c0_41, %c0_42], %101 {strides = array<i32>} : memref<8x2x32xf32, #tpu.memory_space<vmem>>, vector<1x2x32xf32>,
    %102 = vector.extract_strided_slice %96 {offsets = [0, 32], sizes = [2, 32], strides = [1, 1]} : vector<2x64xf32> to vector<2x32xf32>
    %c7_i32_43 = arith.constant 7 : i32
    %103 = arith.subi %c7_i32_43, %c1_i32 : i32
    %104 = arith.index_cast %103 : i32 to index
    %c0_44 = arith.constant 0 : index
    %c0_45 = arith.constant 0 : index
    %105 = vector.load %arg13[%104, %c0_44, %c0_45] : memref<8x2x32xf32, #tpu.memory_space<vmem>>, vector<1x2x32xf32>
    %106 = vector.shape_cast %105 : vector<1x2x32xf32> to vector<2x32xf32>
    %107 = vector.shape_cast %102 : vector<2x32xf32> to vector<1x2x32xf32>
    tpu.vector_store %arg13[%104, %c0_44, %c0_45], %107 {strides = array<i32>} : memref<8x2x32xf32, #tpu.memory_space<vmem>>, vector<1x2x32xf32>,
    %c2_i32 = arith.constant 2 : i32
    %108 = arith.index_cast %c2_i32 : i32 to index
    %c0_46 = arith.constant 0 : index
    %c0_47 = arith.constant 0 : index
    %109 = vector.load %arg10[%108, %c0_46, %c0_47] : memref<8x2x256xf32, #tpu.memory_space<vmem>>, vector<1x2x256xf32>
    %110 = vector.shape_cast %109 : vector<1x2x256xf32> to vector<2x256xf32>
    %c7_i32_48 = arith.constant 7 : i32
    %111 = arith.subi %c7_i32_48, %c2_i32 : i32
    %112 = arith.index_cast %111 : i32 to index
    %c0_49 = arith.constant 0 : index
    %c0_50 = arith.constant 0 : index
    %113 = vector.load %arg11[%112, %c0_49, %c0_50] : memref<8x2x256xf32, #tpu.memory_space<vmem>>, vector<1x2x256xf32>
    %114 = vector.shape_cast %113 : vector<1x2x256xf32> to vector<2x256xf32>
    %115 = arith.addf %110, %114 : vector<2x256xf32>
    %cst_51 = arith.constant dense<0.000000e+00> : vector<2x256xf32>
    %116 = tpu.matmul %96, %3, %cst_51 {dimension_numbers = #tpu.dot_dimension_numbers<[1], [0], [0], [1], [0, 0, 1, 1], [], []>} : vector<2x64xf32>, vector<64x256xf32>, vector<2x256xf32> -> vector<2x256xf32>
    %117 = arith.addf %115, %116 : vector<2x256xf32>
    %118 = vector.extract_strided_slice %117 {offsets = [0, 0], sizes = [2, 64], strides = [1, 1]} : vector<2x256xf32> to vector<2x64xf32>
    %119 = arith.negf %118 : vector<2x64xf32>
    %120 = math.exp %119 : vector<2x64xf32>
    %cst_52 = arith.constant 1.000000e+00 : f32
    %121 = vector.broadcast %cst_52 : f32 to vector<2x64xf32>
    %122 = arith.addf %121, %120 : vector<2x64xf32>
    %123 = arith.divf %121, %122 : vector<2x64xf32>
    %124 = vector.extract_strided_slice %117 {offsets = [0, 64], sizes = [2, 64], strides = [1, 1]} : vector<2x256xf32> to vector<2x64xf32>
    %125 = arith.negf %124 : vector<2x64xf32>
    %126 = math.exp %125 : vector<2x64xf32>
    %cst_53 = arith.constant 1.000000e+00 : f32
    %127 = vector.broadcast %cst_53 : f32 to vector<2x64xf32>
    %128 = arith.addf %127, %126 : vector<2x64xf32>
    %129 = arith.divf %127, %128 : vector<2x64xf32>
    %130 = vector.extract_strided_slice %117 {offsets = [0, 128], sizes = [2, 64], strides = [1, 1]} : vector<2x256xf32> to vector<2x64xf32>
    %131 = math.tanh %130 : vector<2x64xf32>
    %132 = vector.extract_strided_slice %117 {offsets = [0, 192], sizes = [2, 64], strides = [1, 1]} : vector<2x256xf32> to vector<2x64xf32>
    %133 = arith.negf %132 : vector<2x64xf32>
    %134 = math.exp %133 : vector<2x64xf32>
    %cst_54 = arith.constant 1.000000e+00 : f32
    %135 = vector.broadcast %cst_54 : f32 to vector<2x64xf32>
    %136 = arith.addf %135, %134 : vector<2x64xf32>
    %137 = arith.divf %135, %136 : vector<2x64xf32>
    %138 = arith.mulf %129, %94 : vector<2x64xf32>
    %139 = arith.mulf %123, %131 : vector<2x64xf32>
    %140 = arith.addf %138, %139 : vector<2x64xf32>
    %141 = math.tanh %140 : vector<2x64xf32>
    %142 = arith.mulf %137, %141 : vector<2x64xf32>
    %143 = vector.extract_strided_slice %142 {offsets = [0, 0], sizes = [2, 32], strides = [1, 1]} : vector<2x64xf32> to vector<2x32xf32>
    %144 = arith.index_cast %c2_i32 : i32 to index
    %c0_55 = arith.constant 0 : index
    %c0_56 = arith.constant 0 : index
    %145 = vector.load %arg12[%144, %c0_55, %c0_56] : memref<8x2x32xf32, #tpu.memory_space<vmem>>, vector<1x2x32xf32>
    %146 = vector.shape_cast %145 : vector<1x2x32xf32> to vector<2x32xf32>
    %147 = vector.shape_cast %143 : vector<2x32xf32> to vector<1x2x32xf32>
    tpu.vector_store %arg12[%144, %c0_55, %c0_56], %147 {strides = array<i32>} : memref<8x2x32xf32, #tpu.memory_space<vmem>>, vector<1x2x32xf32>,
    %148 = vector.extract_strided_slice %142 {offsets = [0, 32], sizes = [2, 32], strides = [1, 1]} : vector<2x64xf32> to vector<2x32xf32>
    %c7_i32_57 = arith.constant 7 : i32
    %149 = arith.subi %c7_i32_57, %c2_i32 : i32
    %150 = arith.index_cast %149 : i32 to index
    %c0_58 = arith.constant 0 : index
    %c0_59 = arith.constant 0 : index
    %151 = vector.load %arg13[%150, %c0_58, %c0_59] : memref<8x2x32xf32, #tpu.memory_space<vmem>>, vector<1x2x32xf32>
    %152 = vector.shape_cast %151 : vector<1x2x32xf32> to vector<2x32xf32>
    %153 = vector.shape_cast %148 : vector<2x32xf32> to vector<1x2x32xf32>
    tpu.vector_store %arg13[%150, %c0_58, %c0_59], %153 {strides = array<i32>} : memref<8x2x32xf32, #tpu.memory_space<vmem>>, vector<1x2x32xf32>,
    %c3_i32 = arith.constant 3 : i32
    %154 = arith.index_cast %c3_i32 : i32 to index
    %c0_60 = arith.constant 0 : index
    %c0_61 = arith.constant 0 : index
    %155 = vector.load %arg10[%154, %c0_60, %c0_61] : memref<8x2x256xf32, #tpu.memory_space<vmem>>, vector<1x2x256xf32>
    %156 = vector.shape_cast %155 : vector<1x2x256xf32> to vector<2x256xf32>
    %c7_i32_62 = arith.constant 7 : i32
    %157 = arith.subi %c7_i32_62, %c3_i32 : i32
    %158 = arith.index_cast %157 : i32 to index
    %c0_63 = arith.constant 0 : index
    %c0_64 = arith.constant 0 : index
    %159 = vector.load %arg11[%158, %c0_63, %c0_64] : memref<8x2x256xf32, #tpu.memory_space<vmem>>, vector<1x2x256xf32>
    %160 = vector.shape_cast %159 : vector<1x2x256xf32> to vector<2x256xf32>
    %161 = arith.addf %156, %160 : vector<2x256xf32>
    %cst_65 = arith.constant dense<0.000000e+00> : vector<2x256xf32>
    %162 = tpu.matmul %142, %3, %cst_65 {dimension_numbers = #tpu.dot_dimension_numbers<[1], [0], [0], [1], [0, 0, 1, 1], [], []>} : vector<2x64xf32>, vector<64x256xf32>, vector<2x256xf32> -> vector<2x256xf32>
    %163 = arith.addf %161, %162 : vector<2x256xf32>
    %164 = vector.extract_strided_slice %163 {offsets = [0, 0], sizes = [2, 64], strides = [1, 1]} : vector<2x256xf32> to vector<2x64xf32>
    %165 = arith.negf %164 : vector<2x64xf32>
    %166 = math.exp %165 : vector<2x64xf32>
    %cst_66 = arith.constant 1.000000e+00 : f32
    %167 = vector.broadcast %cst_66 : f32 to vector<2x64xf32>
    %168 = arith.addf %167, %166 : vector<2x64xf32>
    %169 = arith.divf %167, %168 : vector<2x64xf32>
    %170 = vector.extract_strided_slice %163 {offsets = [0, 64], sizes = [2, 64], strides = [1, 1]} : vector<2x256xf32> to vector<2x64xf32>
    %171 = arith.negf %170 : vector<2x64xf32>
    %172 = math.exp %171 : vector<2x64xf32>
    %cst_67 = arith.constant 1.000000e+00 : f32
    %173 = vector.broadcast %cst_67 : f32 to vector<2x64xf32>
    %174 = arith.addf %173, %172 : vector<2x64xf32>
    %175 = arith.divf %173, %174 : vector<2x64xf32>
    %176 = vector.extract_strided_slice %163 {offsets = [0, 128], sizes = [2, 64], strides = [1, 1]} : vector<2x256xf32> to vector<2x64xf32>
    %177 = math.tanh %176 : vector<2x64xf32>
    %178 = vector.extract_strided_slice %163 {offsets = [0, 192], sizes = [2, 64], strides = [1, 1]} : vector<2x256xf32> to vector<2x64xf32>
    %179 = arith.negf %178 : vector<2x64xf32>
    %180 = math.exp %179 : vector<2x64xf32>
    %cst_68 = arith.constant 1.000000e+00 : f32
    %181 = vector.broadcast %cst_68 : f32 to vector<2x64xf32>
    %182 = arith.addf %181, %180 : vector<2x64xf32>
    %183 = arith.divf %181, %182 : vector<2x64xf32>
    %184 = arith.mulf %175, %140 : vector<2x64xf32>
    %185 = arith.mulf %169, %177 : vector<2x64xf32>
    %186 = arith.addf %184, %185 : vector<2x64xf32>
    %187 = math.tanh %186 : vector<2x64xf32>
    %188 = arith.mulf %183, %187 : vector<2x64xf32>
    %189 = vector.extract_strided_slice %188 {offsets = [0, 0], sizes = [2, 32], strides = [1, 1]} : vector<2x64xf32> to vector<2x32xf32>
    %190 = arith.index_cast %c3_i32 : i32 to index
    %c0_69 = arith.constant 0 : index
    %c0_70 = arith.constant 0 : index
    %191 = vector.load %arg12[%190, %c0_69, %c0_70] : memref<8x2x32xf32, #tpu.memory_space<vmem>>, vector<1x2x32xf32>
    %192 = vector.shape_cast %191 : vector<1x2x32xf32> to vector<2x32xf32>
    %193 = vector.shape_cast %189 : vector<2x32xf32> to vector<1x2x32xf32>
    tpu.vector_store %arg12[%190, %c0_69, %c0_70], %193 {strides = array<i32>} : memref<8x2x32xf32, #tpu.memory_space<vmem>>, vector<1x2x32xf32>,
    %194 = vector.extract_strided_slice %188 {offsets = [0, 32], sizes = [2, 32], strides = [1, 1]} : vector<2x64xf32> to vector<2x32xf32>
    %c7_i32_71 = arith.constant 7 : i32
    %195 = arith.subi %c7_i32_71, %c3_i32 : i32
    %196 = arith.index_cast %195 : i32 to index
    %c0_72 = arith.constant 0 : index
    %c0_73 = arith.constant 0 : index
    %197 = vector.load %arg13[%196, %c0_72, %c0_73] : memref<8x2x32xf32, #tpu.memory_space<vmem>>, vector<1x2x32xf32>
    %198 = vector.shape_cast %197 : vector<1x2x32xf32> to vector<2x32xf32>
    %199 = vector.shape_cast %194 : vector<2x32xf32> to vector<1x2x32xf32>
    tpu.vector_store %arg13[%196, %c0_72, %c0_73], %199 {strides = array<i32>} : memref<8x2x32xf32, #tpu.memory_space<vmem>>, vector<1x2x32xf32>,
    %c4_i32 = arith.constant 4 : i32
    %200 = arith.index_cast %c4_i32 : i32 to index
    %c0_74 = arith.constant 0 : index
    %c0_75 = arith.constant 0 : index
    %201 = vector.load %arg10[%200, %c0_74, %c0_75] : memref<8x2x256xf32, #tpu.memory_space<vmem>>, vector<1x2x256xf32>
    %202 = vector.shape_cast %201 : vector<1x2x256xf32> to vector<2x256xf32>
    %c7_i32_76 = arith.constant 7 : i32
    %203 = arith.subi %c7_i32_76, %c4_i32 : i32
    %204 = arith.index_cast %203 : i32 to index
    %c0_77 = arith.constant 0 : index
    %c0_78 = arith.constant 0 : index
    %205 = vector.load %arg11[%204, %c0_77, %c0_78] : memref<8x2x256xf32, #tpu.memory_space<vmem>>, vector<1x2x256xf32>
    %206 = vector.shape_cast %205 : vector<1x2x256xf32> to vector<2x256xf32>
    %207 = arith.addf %202, %206 : vector<2x256xf32>
    %cst_79 = arith.constant dense<0.000000e+00> : vector<2x256xf32>
    %208 = tpu.matmul %188, %3, %cst_79 {dimension_numbers = #tpu.dot_dimension_numbers<[1], [0], [0], [1], [0, 0, 1, 1], [], []>} : vector<2x64xf32>, vector<64x256xf32>, vector<2x256xf32> -> vector<2x256xf32>
    %209 = arith.addf %207, %208 : vector<2x256xf32>
    %210 = vector.extract_strided_slice %209 {offsets = [0, 0], sizes = [2, 64], strides = [1, 1]} : vector<2x256xf32> to vector<2x64xf32>
    %211 = arith.negf %210 : vector<2x64xf32>
    %212 = math.exp %211 : vector<2x64xf32>
    %cst_80 = arith.constant 1.000000e+00 : f32
    %213 = vector.broadcast %cst_80 : f32 to vector<2x64xf32>
    %214 = arith.addf %213, %212 : vector<2x64xf32>
    %215 = arith.divf %213, %214 : vector<2x64xf32>
    %216 = vector.extract_strided_slice %209 {offsets = [0, 64], sizes = [2, 64], strides = [1, 1]} : vector<2x256xf32> to vector<2x64xf32>
    %217 = arith.negf %216 : vector<2x64xf32>
    %218 = math.exp %217 : vector<2x64xf32>
    %cst_81 = arith.constant 1.000000e+00 : f32
    %219 = vector.broadcast %cst_81 : f32 to vector<2x64xf32>
    %220 = arith.addf %219, %218 : vector<2x64xf32>
    %221 = arith.divf %219, %220 : vector<2x64xf32>
    %222 = vector.extract_strided_slice %209 {offsets = [0, 128], sizes = [2, 64], strides = [1, 1]} : vector<2x256xf32> to vector<2x64xf32>
    %223 = math.tanh %222 : vector<2x64xf32>
    %224 = vector.extract_strided_slice %209 {offsets = [0, 192], sizes = [2, 64], strides = [1, 1]} : vector<2x256xf32> to vector<2x64xf32>
    %225 = arith.negf %224 : vector<2x64xf32>
    %226 = math.exp %225 : vector<2x64xf32>
    %cst_82 = arith.constant 1.000000e+00 : f32
    %227 = vector.broadcast %cst_82 : f32 to vector<2x64xf32>
    %228 = arith.addf %227, %226 : vector<2x64xf32>
    %229 = arith.divf %227, %228 : vector<2x64xf32>
    %230 = arith.mulf %221, %186 : vector<2x64xf32>
    %231 = arith.mulf %215, %223 : vector<2x64xf32>
    %232 = arith.addf %230, %231 : vector<2x64xf32>
    %233 = math.tanh %232 : vector<2x64xf32>
    %234 = arith.mulf %229, %233 : vector<2x64xf32>
    %235 = vector.extract_strided_slice %234 {offsets = [0, 0], sizes = [2, 32], strides = [1, 1]} : vector<2x64xf32> to vector<2x32xf32>
    %236 = arith.index_cast %c4_i32 : i32 to index
    %c0_83 = arith.constant 0 : index
    %c0_84 = arith.constant 0 : index
    %237 = vector.load %arg12[%236, %c0_83, %c0_84] : memref<8x2x32xf32, #tpu.memory_space<vmem>>, vector<1x2x32xf32>
    %238 = vector.shape_cast %237 : vector<1x2x32xf32> to vector<2x32xf32>
    %239 = vector.shape_cast %235 : vector<2x32xf32> to vector<1x2x32xf32>
    tpu.vector_store %arg12[%236, %c0_83, %c0_84], %239 {strides = array<i32>} : memref<8x2x32xf32, #tpu.memory_space<vmem>>, vector<1x2x32xf32>,
    %240 = vector.extract_strided_slice %234 {offsets = [0, 32], sizes = [2, 32], strides = [1, 1]} : vector<2x64xf32> to vector<2x32xf32>
    %c7_i32_85 = arith.constant 7 : i32
    %241 = arith.subi %c7_i32_85, %c4_i32 : i32
    %242 = arith.index_cast %241 : i32 to index
    %c0_86 = arith.constant 0 : index
    %c0_87 = arith.constant 0 : index
    %243 = vector.load %arg13[%242, %c0_86, %c0_87] : memref<8x2x32xf32, #tpu.memory_space<vmem>>, vector<1x2x32xf32>
    %244 = vector.shape_cast %243 : vector<1x2x32xf32> to vector<2x32xf32>
    %245 = vector.shape_cast %240 : vector<2x32xf32> to vector<1x2x32xf32>
    tpu.vector_store %arg13[%242, %c0_86, %c0_87], %245 {strides = array<i32>} : memref<8x2x32xf32, #tpu.memory_space<vmem>>, vector<1x2x32xf32>,
    %c5_i32 = arith.constant 5 : i32
    %246 = arith.index_cast %c5_i32 : i32 to index
    %c0_88 = arith.constant 0 : index
    %c0_89 = arith.constant 0 : index
    %247 = vector.load %arg10[%246, %c0_88, %c0_89] : memref<8x2x256xf32, #tpu.memory_space<vmem>>, vector<1x2x256xf32>
    %248 = vector.shape_cast %247 : vector<1x2x256xf32> to vector<2x256xf32>
    %c7_i32_90 = arith.constant 7 : i32
    %249 = arith.subi %c7_i32_90, %c5_i32 : i32
    %250 = arith.index_cast %249 : i32 to index
    %c0_91 = arith.constant 0 : index
    %c0_92 = arith.constant 0 : index
    %251 = vector.load %arg11[%250, %c0_91, %c0_92] : memref<8x2x256xf32, #tpu.memory_space<vmem>>, vector<1x2x256xf32>
    %252 = vector.shape_cast %251 : vector<1x2x256xf32> to vector<2x256xf32>
    %253 = arith.addf %248, %252 : vector<2x256xf32>
    %cst_93 = arith.constant dense<0.000000e+00> : vector<2x256xf32>
    %254 = tpu.matmul %234, %3, %cst_93 {dimension_numbers = #tpu.dot_dimension_numbers<[1], [0], [0], [1], [0, 0, 1, 1], [], []>} : vector<2x64xf32>, vector<64x256xf32>, vector<2x256xf32> -> vector<2x256xf32>
    %255 = arith.addf %253, %254 : vector<2x256xf32>
    %256 = vector.extract_strided_slice %255 {offsets = [0, 0], sizes = [2, 64], strides = [1, 1]} : vector<2x256xf32> to vector<2x64xf32>
    %257 = arith.negf %256 : vector<2x64xf32>
    %258 = math.exp %257 : vector<2x64xf32>
    %cst_94 = arith.constant 1.000000e+00 : f32
    %259 = vector.broadcast %cst_94 : f32 to vector<2x64xf32>
    %260 = arith.addf %259, %258 : vector<2x64xf32>
    %261 = arith.divf %259, %260 : vector<2x64xf32>
    %262 = vector.extract_strided_slice %255 {offsets = [0, 64], sizes = [2, 64], strides = [1, 1]} : vector<2x256xf32> to vector<2x64xf32>
    %263 = arith.negf %262 : vector<2x64xf32>
    %264 = math.exp %263 : vector<2x64xf32>
    %cst_95 = arith.constant 1.000000e+00 : f32
    %265 = vector.broadcast %cst_95 : f32 to vector<2x64xf32>
    %266 = arith.addf %265, %264 : vector<2x64xf32>
    %267 = arith.divf %265, %266 : vector<2x64xf32>
    %268 = vector.extract_strided_slice %255 {offsets = [0, 128], sizes = [2, 64], strides = [1, 1]} : vector<2x256xf32> to vector<2x64xf32>
    %269 = math.tanh %268 : vector<2x64xf32>
    %270 = vector.extract_strided_slice %255 {offsets = [0, 192], sizes = [2, 64], strides = [1, 1]} : vector<2x256xf32> to vector<2x64xf32>
    %271 = arith.negf %270 : vector<2x64xf32>
    %272 = math.exp %271 : vector<2x64xf32>
    %cst_96 = arith.constant 1.000000e+00 : f32
    %273 = vector.broadcast %cst_96 : f32 to vector<2x64xf32>
    %274 = arith.addf %273, %272 : vector<2x64xf32>
    %275 = arith.divf %273, %274 : vector<2x64xf32>
    %276 = arith.mulf %267, %232 : vector<2x64xf32>
    %277 = arith.mulf %261, %269 : vector<2x64xf32>
    %278 = arith.addf %276, %277 : vector<2x64xf32>
    %279 = math.tanh %278 : vector<2x64xf32>
    %280 = arith.mulf %275, %279 : vector<2x64xf32>
    %281 = vector.extract_strided_slice %280 {offsets = [0, 0], sizes = [2, 32], strides = [1, 1]} : vector<2x64xf32> to vector<2x32xf32>
    %282 = arith.index_cast %c5_i32 : i32 to index
    %c0_97 = arith.constant 0 : index
    %c0_98 = arith.constant 0 : index
    %283 = vector.load %arg12[%282, %c0_97, %c0_98] : memref<8x2x32xf32, #tpu.memory_space<vmem>>, vector<1x2x32xf32>
    %284 = vector.shape_cast %283 : vector<1x2x32xf32> to vector<2x32xf32>
    %285 = vector.shape_cast %281 : vector<2x32xf32> to vector<1x2x32xf32>
    tpu.vector_store %arg12[%282, %c0_97, %c0_98], %285 {strides = array<i32>} : memref<8x2x32xf32, #tpu.memory_space<vmem>>, vector<1x2x32xf32>,
    %286 = vector.extract_strided_slice %280 {offsets = [0, 32], sizes = [2, 32], strides = [1, 1]} : vector<2x64xf32> to vector<2x32xf32>
    %c7_i32_99 = arith.constant 7 : i32
    %287 = arith.subi %c7_i32_99, %c5_i32 : i32
    %288 = arith.index_cast %287 : i32 to index
    %c0_100 = arith.constant 0 : index
    %c0_101 = arith.constant 0 : index
    %289 = vector.load %arg13[%288, %c0_100, %c0_101] : memref<8x2x32xf32, #tpu.memory_space<vmem>>, vector<1x2x32xf32>
    %290 = vector.shape_cast %289 : vector<1x2x32xf32> to vector<2x32xf32>
    %291 = vector.shape_cast %286 : vector<2x32xf32> to vector<1x2x32xf32>
    tpu.vector_store %arg13[%288, %c0_100, %c0_101], %291 {strides = array<i32>} : memref<8x2x32xf32, #tpu.memory_space<vmem>>, vector<1x2x32xf32>,
    %c6_i32 = arith.constant 6 : i32
    %292 = arith.index_cast %c6_i32 : i32 to index
    %c0_102 = arith.constant 0 : index
    %c0_103 = arith.constant 0 : index
    %293 = vector.load %arg10[%292, %c0_102, %c0_103] : memref<8x2x256xf32, #tpu.memory_space<vmem>>, vector<1x2x256xf32>
    %294 = vector.shape_cast %293 : vector<1x2x256xf32> to vector<2x256xf32>
    %c7_i32_104 = arith.constant 7 : i32
    %295 = arith.subi %c7_i32_104, %c6_i32 : i32
    %296 = arith.index_cast %295 : i32 to index
    %c0_105 = arith.constant 0 : index
    %c0_106 = arith.constant 0 : index
    %297 = vector.load %arg11[%296, %c0_105, %c0_106] : memref<8x2x256xf32, #tpu.memory_space<vmem>>, vector<1x2x256xf32>
    %298 = vector.shape_cast %297 : vector<1x2x256xf32> to vector<2x256xf32>
    %299 = arith.addf %294, %298 : vector<2x256xf32>
    %cst_107 = arith.constant dense<0.000000e+00> : vector<2x256xf32>
    %300 = tpu.matmul %280, %3, %cst_107 {dimension_numbers = #tpu.dot_dimension_numbers<[1], [0], [0], [1], [0, 0, 1, 1], [], []>} : vector<2x64xf32>, vector<64x256xf32>, vector<2x256xf32> -> vector<2x256xf32>
    %301 = arith.addf %299, %300 : vector<2x256xf32>
    %302 = vector.extract_strided_slice %301 {offsets = [0, 0], sizes = [2, 64], strides = [1, 1]} : vector<2x256xf32> to vector<2x64xf32>
    %303 = arith.negf %302 : vector<2x64xf32>
    %304 = math.exp %303 : vector<2x64xf32>
    %cst_108 = arith.constant 1.000000e+00 : f32
    %305 = vector.broadcast %cst_108 : f32 to vector<2x64xf32>
    %306 = arith.addf %305, %304 : vector<2x64xf32>
    %307 = arith.divf %305, %306 : vector<2x64xf32>
    %308 = vector.extract_strided_slice %301 {offsets = [0, 64], sizes = [2, 64], strides = [1, 1]} : vector<2x256xf32> to vector<2x64xf32>
    %309 = arith.negf %308 : vector<2x64xf32>
    %310 = math.exp %309 : vector<2x64xf32>
    %cst_109 = arith.constant 1.000000e+00 : f32
    %311 = vector.broadcast %cst_109 : f32 to vector<2x64xf32>
    %312 = arith.addf %311, %310 : vector<2x64xf32>
    %313 = arith.divf %311, %312 : vector<2x64xf32>
    %314 = vector.extract_strided_slice %301 {offsets = [0, 128], sizes = [2, 64], strides = [1, 1]} : vector<2x256xf32> to vector<2x64xf32>
    %315 = math.tanh %314 : vector<2x64xf32>
    %316 = vector.extract_strided_slice %301 {offsets = [0, 192], sizes = [2, 64], strides = [1, 1]} : vector<2x256xf32> to vector<2x64xf32>
    %317 = arith.negf %316 : vector<2x64xf32>
    %318 = math.exp %317 : vector<2x64xf32>
    %cst_110 = arith.constant 1.000000e+00 : f32
    %319 = vector.broadcast %cst_110 : f32 to vector<2x64xf32>
    %320 = arith.addf %319, %318 : vector<2x64xf32>
    %321 = arith.divf %319, %320 : vector<2x64xf32>
    %322 = arith.mulf %313, %278 : vector<2x64xf32>
    %323 = arith.mulf %307, %315 : vector<2x64xf32>
    %324 = arith.addf %322, %323 : vector<2x64xf32>
    %325 = math.tanh %324 : vector<2x64xf32>
    %326 = arith.mulf %321, %325 : vector<2x64xf32>
    %327 = vector.extract_strided_slice %326 {offsets = [0, 0], sizes = [2, 32], strides = [1, 1]} : vector<2x64xf32> to vector<2x32xf32>
    %328 = arith.index_cast %c6_i32 : i32 to index
    %c0_111 = arith.constant 0 : index
    %c0_112 = arith.constant 0 : index
    %329 = vector.load %arg12[%328, %c0_111, %c0_112] : memref<8x2x32xf32, #tpu.memory_space<vmem>>, vector<1x2x32xf32>
    %330 = vector.shape_cast %329 : vector<1x2x32xf32> to vector<2x32xf32>
    %331 = vector.shape_cast %327 : vector<2x32xf32> to vector<1x2x32xf32>
    tpu.vector_store %arg12[%328, %c0_111, %c0_112], %331 {strides = array<i32>} : memref<8x2x32xf32, #tpu.memory_space<vmem>>, vector<1x2x32xf32>,
    %332 = vector.extract_strided_slice %326 {offsets = [0, 32], sizes = [2, 32], strides = [1, 1]} : vector<2x64xf32> to vector<2x32xf32>
    %c7_i32_113 = arith.constant 7 : i32
    %333 = arith.subi %c7_i32_113, %c6_i32 : i32
    %334 = arith.index_cast %333 : i32 to index
    %c0_114 = arith.constant 0 : index
    %c0_115 = arith.constant 0 : index
    %335 = vector.load %arg13[%334, %c0_114, %c0_115] : memref<8x2x32xf32, #tpu.memory_space<vmem>>, vector<1x2x32xf32>
    %336 = vector.shape_cast %335 : vector<1x2x32xf32> to vector<2x32xf32>
    %337 = vector.shape_cast %332 : vector<2x32xf32> to vector<1x2x32xf32>
    tpu.vector_store %arg13[%334, %c0_114, %c0_115], %337 {strides = array<i32>} : memref<8x2x32xf32, #tpu.memory_space<vmem>>, vector<1x2x32xf32>,
    %c7_i32_116 = arith.constant 7 : i32
    %338 = arith.index_cast %c7_i32_116 : i32 to index
    %c0_117 = arith.constant 0 : index
    %c0_118 = arith.constant 0 : index
    %339 = vector.load %arg10[%338, %c0_117, %c0_118] : memref<8x2x256xf32, #tpu.memory_space<vmem>>, vector<1x2x256xf32>
    %340 = vector.shape_cast %339 : vector<1x2x256xf32> to vector<2x256xf32>
    %c7_i32_119 = arith.constant 7 : i32
    %341 = arith.subi %c7_i32_119, %c7_i32_116 : i32
    %342 = arith.index_cast %341 : i32 to index
    %c0_120 = arith.constant 0 : index
    %c0_121 = arith.constant 0 : index
    %343 = vector.load %arg11[%342, %c0_120, %c0_121] : memref<8x2x256xf32, #tpu.memory_space<vmem>>, vector<1x2x256xf32>
    %344 = vector.shape_cast %343 : vector<1x2x256xf32> to vector<2x256xf32>
    %345 = arith.addf %340, %344 : vector<2x256xf32>
    %cst_122 = arith.constant dense<0.000000e+00> : vector<2x256xf32>
    %346 = tpu.matmul %326, %3, %cst_122 {dimension_numbers = #tpu.dot_dimension_numbers<[1], [0], [0], [1], [0, 0, 1, 1], [], []>} : vector<2x64xf32>, vector<64x256xf32>, vector<2x256xf32> -> vector<2x256xf32>
    %347 = arith.addf %345, %346 : vector<2x256xf32>
    %348 = vector.extract_strided_slice %347 {offsets = [0, 0], sizes = [2, 64], strides = [1, 1]} : vector<2x256xf32> to vector<2x64xf32>
    %349 = arith.negf %348 : vector<2x64xf32>
    %350 = math.exp %349 : vector<2x64xf32>
    %cst_123 = arith.constant 1.000000e+00 : f32
    %351 = vector.broadcast %cst_123 : f32 to vector<2x64xf32>
    %352 = arith.addf %351, %350 : vector<2x64xf32>
    %353 = arith.divf %351, %352 : vector<2x64xf32>
    %354 = vector.extract_strided_slice %347 {offsets = [0, 64], sizes = [2, 64], strides = [1, 1]} : vector<2x256xf32> to vector<2x64xf32>
    %355 = arith.negf %354 : vector<2x64xf32>
    %356 = math.exp %355 : vector<2x64xf32>
    %cst_124 = arith.constant 1.000000e+00 : f32
    %357 = vector.broadcast %cst_124 : f32 to vector<2x64xf32>
    %358 = arith.addf %357, %356 : vector<2x64xf32>
    %359 = arith.divf %357, %358 : vector<2x64xf32>
    %360 = vector.extract_strided_slice %347 {offsets = [0, 128], sizes = [2, 64], strides = [1, 1]} : vector<2x256xf32> to vector<2x64xf32>
    %361 = math.tanh %360 : vector<2x64xf32>
    %362 = vector.extract_strided_slice %347 {offsets = [0, 192], sizes = [2, 64], strides = [1, 1]} : vector<2x256xf32> to vector<2x64xf32>
    %363 = arith.negf %362 : vector<2x64xf32>
    %364 = math.exp %363 : vector<2x64xf32>
    %cst_125 = arith.constant 1.000000e+00 : f32
    %365 = vector.broadcast %cst_125 : f32 to vector<2x64xf32>
    %366 = arith.addf %365, %364 : vector<2x64xf32>
    %367 = arith.divf %365, %366 : vector<2x64xf32>
    %368 = arith.mulf %359, %324 : vector<2x64xf32>
    %369 = arith.mulf %353, %361 : vector<2x64xf32>
    %370 = arith.addf %368, %369 : vector<2x64xf32>
    %371 = math.tanh %370 : vector<2x64xf32>
    %372 = arith.mulf %367, %371 : vector<2x64xf32>
    %373 = vector.extract_strided_slice %372 {offsets = [0, 0], sizes = [2, 32], strides = [1, 1]} : vector<2x64xf32> to vector<2x32xf32>
    %374 = arith.index_cast %c7_i32_116 : i32 to index
    %c0_126 = arith.constant 0 : index
    %c0_127 = arith.constant 0 : index
    %375 = vector.load %arg12[%374, %c0_126, %c0_127] : memref<8x2x32xf32, #tpu.memory_space<vmem>>, vector<1x2x32xf32>
    %376 = vector.shape_cast %375 : vector<1x2x32xf32> to vector<2x32xf32>
    %377 = vector.shape_cast %373 : vector<2x32xf32> to vector<1x2x32xf32>
    tpu.vector_store %arg12[%374, %c0_126, %c0_127], %377 {strides = array<i32>} : memref<8x2x32xf32, #tpu.memory_space<vmem>>, vector<1x2x32xf32>,
    %378 = vector.extract_strided_slice %372 {offsets = [0, 32], sizes = [2, 32], strides = [1, 1]} : vector<2x64xf32> to vector<2x32xf32>
    %c7_i32_128 = arith.constant 7 : i32
    %379 = arith.subi %c7_i32_128, %c7_i32_116 : i32
    %380 = arith.index_cast %379 : i32 to index
    %c0_129 = arith.constant 0 : index
    %c0_130 = arith.constant 0 : index
    %381 = vector.load %arg13[%380, %c0_129, %c0_130] : memref<8x2x32xf32, #tpu.memory_space<vmem>>, vector<1x2x32xf32>
    %382 = vector.shape_cast %381 : vector<1x2x32xf32> to vector<2x32xf32>
    %383 = vector.shape_cast %378 : vector<2x32xf32> to vector<1x2x32xf32>
    tpu.vector_store %arg13[%380, %c0_129, %c0_130], %383 {strides = array<i32>} : memref<8x2x32xf32, #tpu.memory_space<vmem>>, vector<1x2x32xf32>,
    %c8_i32 = arith.constant 8 : i32
    %c0_131 = arith.constant 0 : index
    %c0_132 = arith.constant 0 : index
    %c0_133 = arith.constant 0 : index
    %384 = vector.load %arg12[%c0_131, %c0_132, %c0_133] : memref<8x2x32xf32, #tpu.memory_space<vmem>>, vector<8x2x32xf32>
    %c0_134 = arith.constant 0 : index
    %c0_135 = arith.constant 0 : index
    %c0_136 = arith.constant 0 : index
    %385 = vector.load %arg13[%c0_134, %c0_135, %c0_136] : memref<8x2x32xf32, #tpu.memory_space<vmem>>, vector<8x2x32xf32>
    %386 = tpu.concatenate %384, %385 in 2 : vector<8x2x32xf32>, vector<8x2x32xf32> -> vector<8x2x64xf32>
    %387 = math.tanh %386 : vector<8x2x64xf32>
    %388 = vector.shape_cast %387 : vector<8x2x64xf32> to vector<16x64xf32>
    %c0_137 = arith.constant 0 : index
    %c0_138 = arith.constant 0 : index
    %389 = vector.load %arg6[%c0_137, %c0_138] : memref<64x1xf32, #tpu.memory_space<vmem>>, vector<64x1xf32>
    %cst_139 = arith.constant dense<0.000000e+00> : vector<16x1xf32>
    %390 = tpu.matmul %388, %389, %cst_139 {dimension_numbers = #tpu.dot_dimension_numbers<[1], [0], [0], [1], [0, 0, 1, 1], [], []>} : vector<16x64xf32>, vector<64x1xf32>, vector<16x1xf32> -> vector<16x1xf32>
    %391 = vector.shape_cast %390 : vector<16x1xf32> to vector<8x2x1xf32>
    %cst_140 = arith.constant dense<0xFF800000> : vector<2x1xf32>
    %392 = vector.multi_reduction <maximumf>, %391, %cst_140 [0] : vector<8x2x1xf32> to vector<2x1xf32>
    %393 = vector.shape_cast %392 : vector<2x1xf32> to vector<1x2x1xf32>
    %394 = vector.broadcast %393 : vector<1x2x1xf32> to vector<8x2x1xf32>
    %395 = arith.subf %391, %394 : vector<8x2x1xf32>
    %396 = math.exp %395 : vector<8x2x1xf32>
    %cst_141 = arith.constant dense<0.000000e+00> : vector<2x1xf32>
    %397 = vector.multi_reduction <add>, %396, %cst_141 [0] : vector<8x2x1xf32> to vector<2x1xf32>
    %398 = vector.shape_cast %397 : vector<2x1xf32> to vector<1x2x1xf32>
    %399 = vector.broadcast %398 : vector<1x2x1xf32> to vector<8x2x1xf32>
    %400 = arith.divf %396, %399 : vector<8x2x1xf32>
    %401 = vector.broadcast %400 : vector<8x2x1xf32> to vector<8x2x64xf32>
    %402 = arith.mulf %386, %401 : vector<8x2x64xf32>
    %cst_142 = arith.constant dense<0.000000e+00> : vector<2x64xf32>
    %403 = vector.multi_reduction <add>, %402, %cst_142 [0] : vector<8x2x64xf32> to vector<2x64xf32>
    %cst_143 = arith.constant 0.000000e+00 : f32
    %404 = vector.broadcast %cst_143 : f32 to vector<2x64xf32>
    %405 = arith.maximumf %403, %404 : vector<2x64xf32>
    %c0_144 = arith.constant 0 : index
    %c0_145 = arith.constant 0 : index
    %406 = vector.load %arg7[%c0_144, %c0_145] : memref<64x4xf32, #tpu.memory_space<vmem>>, vector<64x4xf32>
    %cst_146 = arith.constant dense<0.000000e+00> : vector<2x4xf32>
    %407 = tpu.matmul %405, %406, %cst_146 {dimension_numbers = #tpu.dot_dimension_numbers<[1], [0], [0], [1], [0, 0, 1, 1], [], []>} : vector<2x64xf32>, vector<64x4xf32>, vector<2x4xf32> -> vector<2x4xf32>
    %c0_147 = arith.constant 0 : index
    %c0_148 = arith.constant 0 : index
    %408 = vector.load %arg8[%c0_147, %c0_148] : memref<1x4xf32, #tpu.memory_space<vmem>>, vector<1x4xf32>
    %409 = vector.broadcast %408 : vector<1x4xf32> to vector<2x4xf32>
    %410 = arith.addf %407, %409 : vector<2x4xf32>
    %cst_149 = arith.constant dense<0xFF800000> : vector<2xf32>
    %411 = vector.multi_reduction <maximumf>, %410, %cst_149 [1] : vector<2x4xf32> to vector<2xf32>
    %412 = vector.shape_cast %411 : vector<2xf32> to vector<2x1xf32>
    %413 = vector.broadcast %412 : vector<2x1xf32> to vector<2x4xf32>
    %414 = arith.subf %410, %413 : vector<2x4xf32>
    %415 = math.exp %414 : vector<2x4xf32>
    %cst_150 = arith.constant dense<0.000000e+00> : vector<2xf32>
    %416 = vector.multi_reduction <add>, %415, %cst_150 [1] : vector<2x4xf32> to vector<2xf32>
    %417 = vector.shape_cast %416 : vector<2xf32> to vector<2x1xf32>
    %418 = math.log %417 : vector<2x1xf32>
    %419 = vector.broadcast %418 : vector<2x1xf32> to vector<2x4xf32>
    %420 = arith.subf %414, %419 : vector<2x4xf32>
    %c0_151 = arith.constant 0 : index
    %c0_152 = arith.constant 0 : index
    %421 = vector.load %arg9[%c0_151, %c0_152] : memref<2x4xf32, #tpu.memory_space<vmem>>, vector<2x4xf32>
    tpu.vector_store %arg9[%c0_151, %c0_152], %420 {strides = array<i32>} : memref<2x4xf32, #tpu.memory_space<vmem>>, vector<2x4xf32>,
    return
  }
  func.func @transform_0(%arg0: i32) -> (i32, i32, i32) {
    %c0_i32 = arith.constant 0 : i32
    %c0_i32_0 = arith.constant 0 : i32
    %c0_i32_1 = arith.constant 0 : i32
    return %c0_i32, %arg0, %c0_i32_0 : i32, i32, i32
  }
  func.func @transform_1(%arg0: i32) -> (i32, i32) {
    %c0_i32 = arith.constant 0 : i32
    %c0_i32_0 = arith.constant 0 : i32
    %c0_i32_1 = arith.constant 0 : i32
    return %c0_i32, %c0_i32_0 : i32, i32
  }
  func.func @transform_2(%arg0: i32) -> (i32, i32) {
    %c0_i32 = arith.constant 0 : i32
    %c0_i32_0 = arith.constant 0 : i32
    %c0_i32_1 = arith.constant 0 : i32
    return %c0_i32, %c0_i32_0 : i32, i32
  }
  func.func @transform_3(%arg0: i32) -> (i32, i32) {
    %c0_i32 = arith.constant 0 : i32
    %c0_i32_0 = arith.constant 0 : i32
    %c0_i32_1 = arith.constant 0 : i32
    return %c0_i32, %c0_i32_0 : i32, i32
  }
  func.func @transform_4(%arg0: i32) -> (i32, i32) {
    %c0_i32 = arith.constant 0 : i32
    %c0_i32_0 = arith.constant 0 : i32
    %c0_i32_1 = arith.constant 0 : i32
    return %c0_i32, %c0_i32_0 : i32, i32
  }
  func.func @transform_5(%arg0: i32) -> (i32, i32) {
    %c0_i32 = arith.constant 0 : i32
    %c0_i32_0 = arith.constant 0 : i32
    %c0_i32_1 = arith.constant 0 : i32
    return %c0_i32, %c0_i32_0 : i32, i32
  }
  func.func @transform_6(%arg0: i32) -> (i32, i32) {
    %c0_i32 = arith.constant 0 : i32
    %c0_i32_0 = arith.constant 0 : i32
    %c0_i32_1 = arith.constant 0 : i32
    return %c0_i32, %c0_i32_0 : i32, i32
  }
  func.func @transform_7(%arg0: i32) -> (i32, i32) {
    %c0_i32 = arith.constant 0 : i32
    %c0_i32_0 = arith.constant 0 : i32
    %c0_i32_1 = arith.constant 0 : i32
    return %c0_i32, %c0_i32_0 : i32, i32
  }
  func.func @transform_8(%arg0: i32) -> (i32, i32) {
    %c0_i32 = arith.constant 0 : i32
    %c0_i32_0 = arith.constant 0 : i32
    return %arg0, %c0_i32 : i32, i32
  }
}

</mosaic_0001>

<bundles_post_ra>
// kernel: text_rnn_att_forward.1
= control target key start
LH: loop header
LB: loop body
LE: loop exit
PB: predicated region body
PF: predicated region fallthrough
CT: control target
= control target key end

     0   :  { %v72_v3 = vlaneseq  ;;  %v2474_v8 = vmov 0.0   ;;  %v2475_v9 = vmov 1983009808   ;;  %vm124_vm0 = vcmask 261120   ;;  %s3020_s0 = inlined_call_operand.vmem [shape: f32[8,2,32], index: 0, kind: input, shape index: {}]   ;;  %s3021_s1 = inlined_call_operand.vmem [shape: f32[32,256], index: 1, kind: input, shape index: {}]   ;;  %s3022_s2 = inlined_call_operand.vmem [shape: f32[32,256], index: 2, kind: input, shape index: {}]   ;;  %s3023_s3 = inlined_call_operand.vmem [shape: f32[64,256], index: 3, kind: input, shape index: {}]   ;;  %s3024_s4 = inlined_call_operand.vmem [shape: f32[1,256], index: 4, kind: input, shape index: {}]   ;;  %s3025_s5 = inlined_call_operand.vmem [shape: f32[64,1], index: 5, kind: input, shape index: {}]   ;;  %s3026_s6 = inlined_call_operand.vmem [shape: f32[64,4], index: 6, kind: input, shape index: {}]   ;;  %s3027_s7 = inlined_call_operand.vmem [shape: f32[1,4], index: 7, kind: input, shape index: {}]   ;;  %s3028_s8 = inlined_call_operand.hbm [shape: f32[2,4], index: 8, kind: output, shape index: {}]  }
   0x1   :  { %v39_v0 = vld [vmem:[%s3021_s1 + $0x8] sm:$0xff]  ;;  %v41_v1 = vld [vmem:[%s3021_s1 + $0x18] sm:$0xff]  ;;  %v38_v6 = vld [vmem:[%s3021_s1] sm:$0xff]  ;;  %193 = vmatprep.mubr.f32.mxu0 %v2474_v8  ;;  %326 = vmatprep.mubr.f32.mxu1 %v2474_v8  ;;  %v93_v10 = vunpack.c.l.s4 %v2475_v9 }
   0x2   :  { %v47_v2 = vld [vmem:[%s3022_s2 + $0x8] sm:$0xff]  ;;  %v2132_v4 = vpack.c.bf16 %v41_v1, %v39_v0  ;;  %v49_v5 = vld [vmem:[%s3022_s2 + $0x18] sm:$0xff]  ;;  %v40_v7 = vld [vmem:[%s3021_s1 + $0x10] sm:$0xff]  ;;  %v2558_v16 = vshrl.u32 %v72_v3, 7 }
   0x3   :  { %v2140_v11 = vpack.c.bf16 %v49_v5, %v47_v2  ;;  %v2134_v12 = vpack.c.bf16 %v40_v7, %v38_v6  ;;  %v46_v13 = vld [vmem:[%s3022_s2] sm:$0xff]  ;;  %v48_v14 = vld [vmem:[%s3022_s2 + $0x10] sm:$0xff]  ;;  %v43_v15 = vld [vmem:[%s3021_s1 + $0x28] sm:$0xff]  ;;  %v94_v21 = vunpack.c.0.s8 %v93_v10 }
   0x4   :  { %2133 = vmatprep.subr.bf16.mxu0 %v2132_v4  ;;  %v2142_v17 = vpack.c.bf16 %v48_v14, %v46_v13  ;;  %v45_v18 = vld [vmem:[%s3021_s1 + $0x38] sm:$0xff]  ;;  %v51_v19 = vld [vmem:[%s3022_s2 + $0x28] sm:$0xff]  ;;  %v42_v24 = vld [vmem:[%s3021_s1 + $0x20] sm:$0xff] }
   0x5   :  { %v53_v20 = vld [vmem:[%s3022_s2 + $0x38] sm:$0xff]  ;;  %2141 = vmatprep.subr.bf16.mxu1 %v2140_v11  ;;  %2135 = vmatpush1.bf16.msra.mxu0 %v2134_v12  ;;  %v2136_v22 = vpack.c.bf16 %v45_v18, %v43_v15  ;;  %v44_v25 = vld [vmem:[%s3021_s1 + $0x30] sm:$0xff]  ;;  %v50_v26 = vld [vmem:[%s3022_s2 + $0x20] sm:$0xff]  ;;  %v2588_v31 = vsub.s32 %v94_v21, %v2558_v16 }
   0x6   :  { %v2144_v23 = vpack.c.bf16 %v53_v20, %v51_v19  ;;  %2143 = vmatpush1.bf16.msra.mxu1 %v2142_v17  ;;  %v2138_v27 = vpack.c.bf16 %v44_v25, %v42_v24  ;;  %v52_v28 = vld [vmem:[%s3022_s2 + $0x30] sm:$0xff]  ;;  %v30_v29 = vld [vmem:[%s3020_s0] sm:$0x3]  ;;  %v31_v30 = vld [vmem:[%s3020_s0 + $0x2] sm:$0x3] }
   0x7   :  { %2137 = vmatprep.subr.bf16.mxu0 %v2136_v22  ;;  %v2146_v32 = vpack.c.bf16 %v52_v28, %v50_v26  ;;  %v32_v33 = vld [vmem:[%s3020_s0 + $0x4] sm:$0x3]  ;;  %v33_v34 = vld [vmem:[%s3020_s0 + $0x6] sm:$0x3]  ;;  %v90_v35 = vcombine.low %v30_v29, %v31_v30  ;;  %v55_v36 = vld [vmem:[%s3023_s3 + $0x8] sm:$0xff] }
   0x8   :  { %2145 = vmatprep.subr.bf16.mxu1 %v2144_v23  ;;  %v91_v37 = vcombine.low %v32_v33, %v33_v34  ;;  %v57_v38 = vld [vmem:[%s3023_s3 + $0x18] sm:$0xff]  ;;  %v54_v39 = vld [vmem:[%s3023_s3] sm:$0xff]  ;;  %v56_v40 = vld [vmem:[%s3023_s3 + $0x10] sm:$0xff] }
   0x9   :  { %2139 = vmatpush1.bf16.msra.mxu0 %v2138_v27  ;;  %v98_v41 = vrot.slane %v90_v35, %v2588_v31  ;;  %v2609_v42 = vpack.c.bf16 %v57_v38, %v55_v36  ;;  %v34_v43 = vld [vmem:[%s3020_s0 + $0x8] sm:$0x3]  ;;  %v35_v44 = vld [vmem:[%s3020_s0 + $0xa] sm:$0x3]  ;;  %v36_v45 = vld [vmem:[%s3020_s0 + $0xc] sm:$0x3]  ;;  %v2631_v51 = vpack.c.bf16 %v56_v40, %v54_v39 }
   0xa   :  { %2147 = vmatpush1.bf16.msra.mxu1 %v2146_v32  ;;  %v105_v46 = vrot.slane %v91_v37, %v2588_v31  ;;  %v37_v47 = vld [vmem:[%s3020_s0 + $0xe] sm:$0x3]  ;;  %v107_v48 = vcombine.low %v34_v43, %v35_v44  ;;  %v61_v50 = vld [vmem:[%s3023_s3 + $0x38] sm:$0xff]  ;;  %v58_v56 = vld [vmem:[%s3023_s3 + $0x20] sm:$0xff] }
   0xb   :  { %v59_v49 = vld [vmem:[%s3023_s3 + $0x28] sm:$0xff]  ;;  %2149 = vmatprep.subr.bf16.mxu0 %v2609_v42  ;;  %v108_v52 = vcombine.low %v36_v45, %v37_v47  ;;  %2165 = vmatprep.subr.bf16.mxu1 %v2609_v42  ;;  %v60_v57 = vld [vmem:[%s3023_s3 + $0x30] sm:$0xff]  ;;  %v65_v60 = vld [vmem:[%s3023_s3 + $0x58] sm:$0xff] }
   0xc   :  { %v106_v53 = vcombine.low %v98_v41, %v105_v46  ;;  %v115_v54 = vrot.slane %v107_v48, %v2588_v31  ;;  %v2635_v55 = vpack.c.bf16 %v61_v50, %v59_v49  ;;  %v63_v59 = vld [vmem:[%s3023_s3 + $0x48] sm:$0xff] }
   0xd   :  { %v122_v58 = vrot.slane %v108_v52, %v2588_v31 }
   0xe   :  { %2036 = vmatmul.mubr.msk.f32.vlgmr.msra.gmra.mrb[0].mxu0 %vm124_vm0, %v106_v53  ;;  %2042 = vmatmul.mubr.msk.f32.vlgmr.msra.gmra.mrb[0].mxu1 %vm124_vm0, %v106_v53 }
   0xf   :  { %13 = vsyncpa [#allocation7], 0  ;;  %2151 = vmatpush1.bf16.msra.mxu0 %v2631_v51  ;;  %199 = vmatprep.mubr.f32.mxu0 %v2474_v8  ;;  %v123_v61 = vcombine.low %v115_v54, %v122_v58  ;;  %v2654_v62 = vpack.c.bf16 %v60_v57, %v58_v56  ;;  %v2658_v63 = vpack.c.bf16 %v65_v60, %v63_v59  ;;  %v62_v0 = vld [vmem:[%s3023_s3 + $0x40] sm:$0xff]  ;;  %v64_v1 = vld [vmem:[%s3023_s3 + $0x50] sm:$0xff]  ;;  %v74_v10 = vsub.s32 0, %v2558_v16  ;;  %s2477_s15 = smov 96  }
  0x10   :  { %332 = vmatprep.mubr.f32.mxu1 %v2474_v8  ;;  %2153 = vmatprep.subr.bf16.mxu0 %v2635_v55  ;;  %v67_v2 = vld [vmem:[%s3023_s3 + $0x68] sm:$0xff]  ;;  %v69_v3 = vld [vmem:[%s3023_s3 + $0x78] sm:$0xff]  ;;  %v2676_v4 = vpack.c.bf16 %v64_v1, %v62_v0  ;;  %v66_v6 = vld [vmem:[%s3023_s3 + $0x60] sm:$0xff]  ;;  %v78_v12 = vsub.s32 1, %v2558_v16  ;;  %vm519_vm1 = vcmask 254976   ;;  %vm399_vm2 = vcmask 523264  }
  0x11   :  { %2167 = vmatpush1.bf16.msra.mxu1 %v2631_v51  ;;  %v2680_v5 = vpack.c.bf16 %v69_v3, %v67_v2  ;;  %v68_v7 = vld [vmem:[%s3023_s3 + $0x70] sm:$0xff]  ;;  %v70_v11 = vld [vmem:[%s3024_s4] sm:$0x3]  ;;  %s2476_s4 = smov 64   ;;  %s2478_s16 = smov 32   ;;  %vm1735_vm3 = vcmask 1024  }
  0x12   :  { %2037 = vmatmul.mubr.msk.f32.gmra.mrb[2].mxu0 %vm124_vm0, %v123_v61  ;;  %2043 = vmatmul.mubr.msk.f32.gmra.mrb[2].mxu1 %vm124_vm0, %v123_v61  ;;  %v2693_v9 = vpack.c.bf16 %v68_v7, %v66_v6  ;;  %v75_v13 = vrot.slane %v70_v11, %v74_v10  ;;  %v79_v14 = vrot.slane %v70_v11, %v78_v12  ;;  %vm2481_vm4 = vmmov 0   ;;  %s2483_s20 = smov [#allocation6]  }
  0x13   :  { %2155 = vmatpush1.bf16.msra.mxu0 %v2654_v62  ;;  %467 = vmatprep.mubr.f32.mxu0 %v2474_v8  ;;  %vm1903_vm5 = vcmask 517120   ;;  %vm2008_vm6 = vcmask 25600  }
  0x14   :  { %2157 = vmatprep.subr.bf16.mxu0 %v2658_v63  ;;  %2169 = vmatprep.subr.bf16.mxu1 %v2635_v55 }
  0x15   :  { %2171 = vmatpush1.bf16.msra.mxu1 %v2654_v62  ;;  %605 = vmatprep.mubr.f32.mxu1 %v2474_v8 }
  0x16   :  { %2173 = vmatprep.subr.bf16.mxu1 %v2658_v63 }
  0x17   :  { %2159 = vmatpush1.bf16.msra.mxu0 %v2676_v4 }
  0x18   :  { %2161 = vmatprep.subr.bf16.mxu0 %v2680_v5 }
  0x19   :  { %2175 = vmatpush1.bf16.msra.mxu1 %v2676_v4 }
  0x1a   :  { %2177 = vmatprep.subr.bf16.mxu1 %v2680_v5 }
  0x1b   :  { %2163 = vmatpush1.bf16.msra.mxu0 %v2693_v9 }
  0x1c   :  { %2181 = vmatprep.subr.bf16.mxu0 %v2609_v42 }
  0x1d   :  { %2179 = vmatpush1.bf16.msra.mxu1 %v2693_v9 }
  0x1e   :  { %468 = vmatmul.mubr.f32.vlgmr.msra.gmra.mrb[4].mxu0 %v2474_v8  ;;  %2197 = vmatprep.subr.bf16.mxu1 %v2609_v42 }
  0x1f   :  { %2183 = vmatpush1.bf16.msra.mxu0 %v2631_v51  ;;  %743 = vmatprep.mubr.f32.mxu0 %v2474_v8 }
  0x20   :  { %2185 = vmatprep.subr.bf16.mxu0 %v2635_v55 }
  0x23   :  { %2187 = vmatpush1.bf16.msra.mxu0 %v2654_v62 }
  0x24   :  { %2189 = vmatprep.subr.bf16.mxu0 %v2658_v63 }
  0x27   :  { %2191 = vmatpush1.bf16.msra.mxu0 %v2676_v4 }
  0x28   :  { %2193 = vmatprep.subr.bf16.mxu0 %v2680_v5 }
  0x2b   :  { %2195 = vmatpush1.bf16.msra.mxu0 %v2693_v9 }
  0x2c   :  { %2213 = vmatprep.subr.bf16.mxu0 %v2609_v42 }
  0xe1   :  { %v195_v15 = vpop.f32.mrb[0].mxu0  ;;  %v328_v17 = vpop.f32.mrb[0].mxu1 }
  0xe2   :  { %v196_v18 = vadd.f32 %v195_v15, %v75_v13  ;;  %v197_v19 = vpop.f32.mrb[1].mxu0  ;;  %v330_v20 = vpop.f32.mrb[1].mxu1 }
  0xe3   :  { %v198_v21 = vadd.f32 %v197_v19, %v79_v14  ;;  %v343_v22 = vcombine.low %v328_v17, %v330_v20  ;;  %v344_v23 = vcombine.high %v328_v17, %v330_v20 }
  0xe5   :  { %v210_v24 = vcombine.low %v196_v18, %v198_v21  ;;  %v211_v25 = vcombine.high %v196_v18, %v198_v21  ;;  %v351_v26 = vrot.slane %v343_v22, %v2588_v31  ;;  %v358_v27 = vrot.slane %v344_v23, %v2588_v31  ;;  %2044 = vst.sshfl [vmem:[#allocation3] sm:$0x33 pattern:$0x76325410] %v343_v22  ;;  %v201_v28 = vpop.f32.mrb[2].mxu0  ;;  %v334_v29 = vpop.f32.mrb[2].mxu1 }
  0xe6   :  { %2045 = vst.sshfl [vmem:[#allocation3 + $0x8] sm:$0x33 pattern:$0x76325410] %v344_v23  ;;  %v202_v30 = vadd.f32 %v201_v28, %v75_v13  ;;  %v203_v32 = vpop.f32.mrb[3].mxu0  ;;  %v336_v33 = vpop.f32.mrb[3].mxu1 }
  0xe7   :  { %v218_v34 = vrot.slane %v210_v24, %v2588_v31  ;;  %v225_v35 = vrot.slane %v211_v25, %v2588_v31  ;;  %2038 = vst.sshfl [vmem:[#allocation2] sm:$0x33 pattern:$0x76325410] %v210_v24  ;;  %v359_v36 = vcombine.high %v351_v26, %v351_v26  ;;  %v360_v37 = vcombine.high %v358_v27, %v358_v27 }
  0xe8   :  { %2039 = vst.sshfl [vmem:[#allocation2 + $0x8] sm:$0x33 pattern:$0x76325410] %v211_v25  ;;  %v204_v38 = vadd.f32 %v203_v32, %v79_v14  ;;  %v361_v39 = vcombine.low %v334_v29, %v336_v33  ;;  %v362_v40 = vcombine.high %v334_v29, %v336_v33 }
  0xe9   :  { %v226_v41 = vcombine.high %v218_v34, %v218_v34  ;;  %v227_v43 = vcombine.high %v225_v35, %v225_v35  ;;  %388 = vst [vmem:[#allocation3 + $0x4] sm:$0xf] %v359_v36  ;;  %390 = vst [vmem:[#allocation3 + $0xc] sm:$0xf] %v360_v37 }
  0xea   :  { %v228_v44 = vcombine.low %v202_v30, %v204_v38  ;;  %v229_v45 = vcombine.high %v202_v30, %v204_v38  ;;  %v369_v46 = vrot.slane %v361_v39, %v2588_v31  ;;  %v376_v47 = vrot.slane %v362_v40, %v2588_v31  ;;  %2046 = vst.sshfl [vmem:[#allocation3 + $0x10] sm:$0x33 pattern:$0x76325410] %v361_v39 }
  0xeb   :  { %2047 = vst.sshfl [vmem:[#allocation3 + $0x18] sm:$0x33 pattern:$0x76325410] %v362_v40  ;;  %255 = vst [vmem:[#allocation2 + $0x4] sm:$0xf] %v226_v41 }
  0xec   :  { %257 = vst [vmem:[#allocation2 + $0xc] sm:$0xf] %v227_v43  ;;  %v236_v48 = vrot.slane %v228_v44, %v2588_v31  ;;  %v243_v49 = vrot.slane %v229_v45, %v2588_v31  ;;  %2040 = vst.sshfl [vmem:[#allocation2 + $0x10] sm:$0x33 pattern:$0x76325410] %v228_v44  ;;  %v377_v50 = vcombine.high %v369_v46, %v369_v46 }
  0xed   :  { %2041 = vst.sshfl [vmem:[#allocation2 + $0x18] sm:$0x33 pattern:$0x76325410] %v229_v45  ;;  %v378_v52 = vcombine.high %v376_v47, %v376_v47 }
  0xee   :  { %v244_v53 = vcombine.high %v236_v48, %v236_v48  ;;  %v245_v54 = vcombine.high %v243_v49, %v243_v49  ;;  %392 = vst [vmem:[#allocation3 + $0x14] sm:$0xf] %v377_v50  ;;  %v395_v59 = vld [vmem:[#allocation2] sm:$0xf] }
  0xef   :  { %394 = vst [vmem:[#allocation3 + $0x1c] sm:$0xf] %v378_v52 }
  0xf0   :  { %259 = vst [vmem:[#allocation2 + $0x14] sm:$0xf] %v244_v53  ;;  %261 = vst [vmem:[#allocation2 + $0x1c] sm:$0xf] %v245_v54 }
  0xf1   :  { %v469_v56 = vpop.f32.mrb[4].mxu0 }
  0xf2   :  { %v471_v57 = vpop.f32.mrb[5].mxu0  ;;  %v535_v28 = vld [vmem:[#allocation2 + $0x4] sm:$0xf]  ;;  %v537_v30 = vld [vmem:[#allocation3 + $0x18] sm:$0xf] }
  0xf3   :  { %v476_v58 = vcombine.low %v469_v56, %v471_v57  ;;  %v538_v33 = vadd.f32 %v537_v30, %v535_v28  ;;  %v811_v30 = vld [vmem:[#allocation2 + $0xc] sm:$0xf] }
  0xf5   :  { %v483_v61 = vrot.slane %v476_v58, %v2588_v31 }
  0xf6   :  { %v397_v60 = vld [vmem:[#allocation3 + $0x1c] sm:$0xf] }
  0xf7   :  { %v398_v0 = vadd.f32 %v397_v60, %v395_v59  ;;  %v675_v59 = vld [vmem:[#allocation3 + $0x14] sm:$0xf] }
  0xf9   :  { %v485_v1 = vadd.f32 %v483_v61, %v398_v0  ;;  %v673_v61 = vld [vmem:[#allocation2 + $0x8] sm:$0xf] }
  0xfb   :  { %v2048_v2 = vmul.f32 -1.442695, %v485_v1  ;;  %v493_v3 = vrot.slane %v485_v1, 2 }
  0xfd   :  { %2316 = vpow2.f32 %v2048_v2 }
  0xfe   :  { %2318 = vtanh.f32 %v493_v3 }
 0x107   :  { %v2317_v6 = vpop.eup %2316 }
 0x108   :  { %v489_v7 = vadd.f32 1.0, %v2317_v6  ;;  %v2319_v10 = vpop.eup %2318 }
 0x10a   :  { %2320 = vrcp.f32 %v489_v7 }
 0x114   :  { %v2321_v11 = vpop.eup %2320 }
 0x115   :  { %v507_v12 = vmul.f32 %v2321_v11, %v2319_v10  ;;  %v506_v13 = vmul.f32 0.0, %v2321_v11 }
 0x117   :  { %509 = vrot.lane.b32.xlu0 %v507_v12, %s2476_s4 }
 0x11b   :  { %496 = vrot.lane.b32.xlu0 %v485_v1, %s2476_s4  ;;  %v676_v1 = vadd.f32 %v675_v59, %v673_v61  ;;  %v949_v61 = vld [vmem:[#allocation2 + $0x10] sm:$0xf] }
 0x189   :  { %v510_v14 = vpop.permute.xlu0 %509 }
 0x18a   :  { %v512_v15 = vadd.f32 %v510_v14, %v506_v13 }
 0x18c   :  { %2322 = vtanh.f32 %v512_v15 }
 0x18d   :  { %v497_v18 = vpop.permute.xlu0 %496 }
 0x18e   :  { %v498_v19 = vrot.slane %v497_v18, 2 }
 0x190   :  { %v2049_v20 = vmul.f32 -1.442695, %v498_v19 }
 0x192   :  { %2324 = vpow2.f32 %v2049_v20 }
 0x196   :  { %v2323_v17 = vpop.eup %2322 }
 0x197   :  { %515 = vrot.lane.b32.xlu1 %v2323_v17, %s2476_s4 }
 0x19c   :  { %v2325_v21 = vpop.eup %2324 }
 0x19d   :  { %v503_v22 = vadd.f32 1.0, %v2325_v21 }
 0x19f   :  { %2326 = vrcp.f32 %v503_v22 }
 0x1a9   :  { %v2327_v23 = vpop.eup %2326 }
 0x209   :  { %v516_v24 = vpop.permute.xlu1 %515 }
 0x20a   :  { %v2729_v25 = vmul.f32 %v2327_v23, %v516_v24 }
 0x20c   :  { %520 = vst.msk [vmem:[#allocation4] sm:$0x3] %vm519_vm1, %v2729_v25  ;;  %2050 = vmatmul.mubr.msk.f32.vlgmr.msra.gmra.mrb[4].mxu1 %vm399_vm2, %v2729_v25 }
 0x20d   :  { %2199 = vmatpush1.bf16.msra.mxu1 %v2631_v51  ;;  %881 = vmatprep.mubr.f32.mxu1 %v2474_v8 }
 0x20e   :  { %2201 = vmatprep.subr.bf16.mxu1 %v2635_v55 }
 0x211   :  { %2203 = vmatpush1.bf16.msra.mxu1 %v2654_v62 }
 0x212   :  { %2205 = vmatprep.subr.bf16.mxu1 %v2658_v63 }
 0x215   :  { %2207 = vmatpush1.bf16.msra.mxu1 %v2676_v4 }
 0x216   :  { %2209 = vmatprep.subr.bf16.mxu1 %v2680_v5 }
 0x219   :  { %2211 = vmatpush1.bf16.msra.mxu1 %v2693_v9 }
 0x21a   :  { %2229 = vmatprep.subr.bf16.mxu1 %v2609_v42 }
 0x2df   :  { %v607_v26 = vpop.f32.mrb[4].mxu1 }
 0x2e0   :  { %v609_v27 = vpop.f32.mrb[5].mxu1 }
 0x2e1   :  { %v614_v29 = vcombine.low %v607_v26, %v609_v27 }
 0x2e3   :  { %v621_v32 = vrot.slane %v614_v29, %v2588_v31 }
 0x2e5   :  { %v623_v34 = vadd.f32 %v621_v32, %v538_v33  ;;  %v813_v33 = vld [vmem:[#allocation3 + $0x10] sm:$0xf] }
 0x2e7   :  { %634 = vrot.lane.b32.xlu0 %v623_v34, %s2476_s4  ;;  %v2051_v35 = vmul.f32 -1.442695, %v623_v34  ;;  %v631_v36 = vrot.slane %v623_v34, 2 }
 0x2e9   :  { %2328 = vpow2.f32 %v2051_v35  ;;  %v814_v35 = vadd.f32 %v813_v33, %v811_v30 }
 0x2ea   :  { %2330 = vtanh.f32 %v631_v36 }
 0x2f3   :  { %v2329_v37 = vpop.eup %2328 }
 0x2f4   :  { %v627_v38 = vadd.f32 1.0, %v2329_v37  ;;  %v2331_v39 = vpop.eup %2330 }
 0x2f6   :  { %2332 = vrcp.f32 %v627_v38 }
 0x300   :  { %v2333_v40 = vpop.eup %2332 }
 0x301   :  { %v645_v41 = vmul.f32 %v2333_v40, %v2331_v39  ;;  %v644_v43 = vmul.f32 %v2333_v40, %v512_v15 }
 0x303   :  { %647 = vrot.lane.b32.xlu1 %v645_v41, %s2476_s4 }
 0x359   :  { %v635_v47 = vpop.permute.xlu0 %634 }
 0x35a   :  { %v636_v48 = vrot.slane %v635_v47, 2 }
 0x35c   :  { %v2052_v49 = vmul.f32 -1.442695, %v636_v48 }
 0x375   :  { %v648_v44 = vpop.permute.xlu1 %647 }
 0x376   :  { %v650_v45 = vadd.f32 %v648_v44, %v644_v43 }
 0x378   :  { %2334 = vtanh.f32 %v650_v45 }
 0x379   :  { %2336 = vpow2.f32 %v2052_v49 }
 0x382   :  { %v2335_v46 = vpop.eup %2334 }
 0x383   :  { %653 = vrot.lane.b32.xlu1 %v2335_v46, %s2476_s4  ;;  %v2337_v50 = vpop.eup %2336 }
 0x384   :  { %v641_v52 = vadd.f32 1.0, %v2337_v50 }
 0x386   :  { %2338 = vrcp.f32 %v641_v52 }
 0x390   :  { %v2339_v53 = vpop.eup %2338 }
 0x3f5   :  { %v654_v54 = vpop.permute.xlu1 %653 }
 0x3f6   :  { %v2748_v56 = vmul.f32 %v2339_v53, %v654_v54 }
 0x3f8   :  { %658 = vst.msk [vmem:[#allocation4 + $0x2] sm:$0x3] %vm519_vm1, %v2748_v56  ;;  %2053 = vmatmul.mubr.msk.f32.vlgmr.msra.gmra.mrb[6].mxu0 %vm399_vm2, %v2748_v56 }
 0x3f9   :  { %2215 = vmatpush1.bf16.msra.mxu0 %v2631_v51  ;;  %1019 = vmatprep.mubr.f32.mxu0 %v2474_v8 }
 0x3fa   :  { %2217 = vmatprep.subr.bf16.mxu0 %v2635_v55 }
 0x3fd   :  { %2219 = vmatpush1.bf16.msra.mxu0 %v2654_v62 }
 0x3fe   :  { %2221 = vmatprep.subr.bf16.mxu0 %v2658_v63 }
 0x401   :  { %2223 = vmatpush1.bf16.msra.mxu0 %v2676_v4 }
 0x402   :  { %2225 = vmatprep.subr.bf16.mxu0 %v2680_v5 }
 0x405   :  { %2227 = vmatpush1.bf16.msra.mxu0 %v2693_v9 }
 0x406   :  { %2245 = vmatprep.subr.bf16.mxu0 %v2609_v42 }
 0x4cb   :  { %v745_v57 = vpop.f32.mrb[6].mxu0 }
 0x4cc   :  { %v747_v58 = vpop.f32.mrb[7].mxu0 }
 0x4cd   :  { %v752_v60 = vcombine.low %v745_v57, %v747_v58 }
 0x4cf   :  { %v759_v0 = vrot.slane %v752_v60, %v2588_v31 }
 0x4d1   :  { %v761_v2 = vadd.f32 %v759_v0, %v676_v1  ;;  %v951_v1 = vld [vmem:[#allocation3 + $0xc] sm:$0xf] }
 0x4d3   :  { %772 = vrot.lane.b32.xlu1 %v761_v2, %s2476_s4  ;;  %v2054_v3 = vmul.f32 -1.442695, %v761_v2  ;;  %v769_v6 = vrot.slane %v761_v2, 2 }
 0x4d5   :  { %2340 = vpow2.f32 %v2054_v3  ;;  %v952_v3 = vadd.f32 %v951_v1, %v949_v61 }
 0x4d6   :  { %2342 = vtanh.f32 %v769_v6 }
 0x4df   :  { %v2341_v7 = vpop.eup %2340 }
 0x4e0   :  { %v765_v10 = vadd.f32 1.0, %v2341_v7  ;;  %v2343_v11 = vpop.eup %2342 }
 0x4e2   :  { %2344 = vrcp.f32 %v765_v10 }
 0x4ec   :  { %v2345_v12 = vpop.eup %2344 }
 0x4ed   :  { %v783_v13 = vmul.f32 %v2345_v12, %v2343_v11  ;;  %v782_v14 = vmul.f32 %v2345_v12, %v650_v45 }
 0x4ef   :  { %785 = vrot.lane.b32.xlu0 %v783_v13, %s2476_s4 }
 0x545   :  { %v773_v19 = vpop.permute.xlu1 %772 }
 0x546   :  { %v774_v20 = vrot.slane %v773_v19, 2 }
 0x548   :  { %v2055_v21 = vmul.f32 -1.442695, %v774_v20 }
 0x561   :  { %v786_v15 = vpop.permute.xlu0 %785 }
 0x562   :  { %v788_v17 = vadd.f32 %v786_v15, %v782_v14 }
 0x564   :  { %2346 = vtanh.f32 %v788_v17 }
 0x565   :  { %2348 = vpow2.f32 %v2055_v21 }
 0x56e   :  { %v2347_v18 = vpop.eup %2346 }
 0x56f   :  { %791 = vrot.lane.b32.xlu0 %v2347_v18, %s2476_s4  ;;  %v2349_v22 = vpop.eup %2348 }
 0x570   :  { %v779_v23 = vadd.f32 1.0, %v2349_v22 }
 0x572   :  { %2350 = vrcp.f32 %v779_v23 }
 0x57c   :  { %v2351_v24 = vpop.eup %2350 }
 0x5e1   :  { %v792_v26 = vpop.permute.xlu0 %791 }
 0x5e2   :  { %v2767_v27 = vmul.f32 %v2351_v24, %v792_v26 }
 0x5e4   :  { %796 = vst.msk [vmem:[#allocation4 + $0x4] sm:$0x3] %vm519_vm1, %v2767_v27  ;;  %2056 = vmatmul.mubr.msk.f32.vlgmr.msra.gmra.mrb[6].mxu1 %vm399_vm2, %v2767_v27 }
 0x5e5   :  { %2231 = vmatpush1.bf16.msra.mxu1 %v2631_v51  ;;  %1157 = vmatprep.mubr.f32.mxu1 %v2474_v8 }
 0x5e6   :  { %2233 = vmatprep.subr.bf16.mxu1 %v2635_v55 }
 0x5e9   :  { %2235 = vmatpush1.bf16.msra.mxu1 %v2654_v62 }
 0x5ea   :  { %2237 = vmatprep.subr.bf16.mxu1 %v2658_v63 }
 0x5ed   :  { %2239 = vmatpush1.bf16.msra.mxu1 %v2676_v4 }
 0x5ee   :  { %2241 = vmatprep.subr.bf16.mxu1 %v2680_v5 }
 0x5f1   :  { %2243 = vmatpush1.bf16.msra.mxu1 %v2693_v9 }
 0x5f2   :  { %2261 = vmatprep.subr.bf16.mxu1 %v2609_v42 }
 0x6b7   :  { %v883_v28 = vpop.f32.mrb[6].mxu1 }
 0x6b8   :  { %v885_v29 = vpop.f32.mrb[7].mxu1 }
 0x6b9   :  { %v890_v32 = vcombine.low %v883_v28, %v885_v29 }
 0x6bb   :  { %v897_v34 = vrot.slane %v890_v32, %v2588_v31 }
 0x6bd   :  { %v899_v36 = vadd.f32 %v897_v34, %v814_v35  ;;  %v1087_v34 = vld [vmem:[#allocation2 + $0x14] sm:$0xf] }
 0x6bf   :  { %910 = vrot.lane.b32.xlu0 %v899_v36, %s2476_s4  ;;  %v2057_v37 = vmul.f32 -1.442695, %v899_v36  ;;  %v907_v38 = vrot.slane %v899_v36, 2  ;;  %v1089_v36 = vld [vmem:[#allocation3 + $0x8] sm:$0xf] }
 0x6c1   :  { %2352 = vpow2.f32 %v2057_v37  ;;  %v1090_v37 = vadd.f32 %v1089_v36, %v1087_v34  ;;  %v1364_v34 = vld [vmem:[#allocation3] sm:$0xf] }
 0x6c2   :  { %2354 = vtanh.f32 %v907_v38 }
 0x6cb   :  { %v2353_v39 = vpop.eup %2352 }
 0x6cc   :  { %v903_v40 = vadd.f32 1.0, %v2353_v39  ;;  %v2355_v41 = vpop.eup %2354 }
 0x6ce   :  { %2356 = vrcp.f32 %v903_v40 }
 0x6d8   :  { %v2357_v42 = vpop.eup %2356 }
 0x6d9   :  { %v921_v43 = vmul.f32 %v2357_v42, %v2355_v41  ;;  %v920_v44 = vmul.f32 %v2357_v42, %v788_v17 }
 0x6db   :  { %923 = vrot.lane.b32.xlu1 %v921_v43, %s2476_s4 }
 0x731   :  { %v911_v48 = vpop.permute.xlu0 %910 }
 0x732   :  { %v912_v49 = vrot.slane %v911_v48, 2 }
 0x734   :  { %v2058_v50 = vmul.f32 -1.442695, %v912_v49 }
 0x74d   :  { %v924_v45 = vpop.permute.xlu1 %923 }
 0x74e   :  { %v926_v46 = vadd.f32 %v924_v45, %v920_v44 }
 0x750   :  { %2358 = vtanh.f32 %v926_v46 }
 0x751   :  { %2360 = vpow2.f32 %v2058_v50 }
 0x75a   :  { %v2359_v47 = vpop.eup %2358 }
 0x75b   :  { %929 = vrot.lane.b32.xlu1 %v2359_v47, %s2476_s4  ;;  %v2361_v52 = vpop.eup %2360 }
 0x75c   :  { %v917_v53 = vadd.f32 1.0, %v2361_v52 }
 0x75e   :  { %2362 = vrcp.f32 %v917_v53 }
 0x768   :  { %v2363_v54 = vpop.eup %2362 }
 0x7cd   :  { %v930_v57 = vpop.permute.xlu1 %929 }
 0x7ce   :  { %v2786_v58 = vmul.f32 %v2363_v54, %v930_v57  ;;  %v1225_v57 = vld [vmem:[#allocation2 + $0x18] sm:$0xf] }
 0x7d0   :  { %934 = vst.msk [vmem:[#allocation4 + $0x6] sm:$0x3] %vm519_vm1, %v2786_v58  ;;  %2059 = vmatmul.mubr.msk.f32.vlgmr.msra.gmra.mrb[8].mxu0 %vm399_vm2, %v2786_v58 }
 0x7d1   :  { %2247 = vmatpush1.bf16.msra.mxu0 %v2631_v51  ;;  %1295 = vmatprep.mubr.f32.mxu0 %v2474_v8 }
 0x7d2   :  { %2249 = vmatprep.subr.bf16.mxu0 %v2635_v55 }
 0x7d5   :  { %2251 = vmatpush1.bf16.msra.mxu0 %v2654_v62 }
 0x7d6   :  { %2253 = vmatprep.subr.bf16.mxu0 %v2658_v63 }
 0x7d9   :  { %2255 = vmatpush1.bf16.msra.mxu0 %v2676_v4 }
 0x7da   :  { %2257 = vmatprep.subr.bf16.mxu0 %v2680_v5 }
 0x7dd   :  { %2259 = vmatpush1.bf16.msra.mxu0 %v2693_v9 }
 0x8a3   :  { %v1021_v59 = vpop.f32.mrb[8].mxu0 }
 0x8a4   :  { %v1023_v60 = vpop.f32.mrb[9].mxu0 }
 0x8a5   :  { %v1028_v0 = vcombine.low %v1021_v59, %v1023_v60  ;;  %v1227_v60 = vld [vmem:[#allocation3 + $0x4] sm:$0xf] }
 0x8a7   :  { %v1035_v2 = vrot.slane %v1028_v0, %v2588_v31  ;;  %v1228_v0 = vadd.f32 %v1227_v60, %v1225_v57 }
 0x8a9   :  { %v1037_v6 = vadd.f32 %v1035_v2, %v952_v3 }
 0x8ab   :  { %1048 = vrot.lane.b32.xlu1 %v1037_v6, %s2476_s4  ;;  %v2060_v7 = vmul.f32 -1.442695, %v1037_v6  ;;  %v1045_v10 = vrot.slane %v1037_v6, 2 }
 0x8ad   :  { %2364 = vpow2.f32 %v2060_v7 }
 0x8ae   :  { %2366 = vtanh.f32 %v1045_v10 }
 0x8b7   :  { %v2365_v11 = vpop.eup %2364 }
 0x8b8   :  { %v1041_v12 = vadd.f32 1.0, %v2365_v11  ;;  %v2367_v13 = vpop.eup %2366 }
 0x8ba   :  { %2368 = vrcp.f32 %v1041_v12 }
 0x8c4   :  { %v2369_v14 = vpop.eup %2368 }
 0x8c5   :  { %v1059_v15 = vmul.f32 %v2369_v14, %v2367_v13  ;;  %v1058_v17 = vmul.f32 %v2369_v14, %v926_v46 }
 0x8c7   :  { %1061 = vrot.lane.b32.xlu0 %v1059_v15, %s2476_s4 }
 0x91d   :  { %v1049_v21 = vpop.permute.xlu1 %1048 }
 0x91e   :  { %v1050_v22 = vrot.slane %v1049_v21, 2 }
 0x920   :  { %v2061_v23 = vmul.f32 -1.442695, %v1050_v22 }
 0x939   :  { %v1062_v18 = vpop.permute.xlu0 %1061 }
 0x93a   :  { %v1064_v19 = vadd.f32 %v1062_v18, %v1058_v17 }
 0x93c   :  { %2370 = vtanh.f32 %v1064_v19 }
 0x93d   :  { %2372 = vpow2.f32 %v2061_v23 }
 0x946   :  { %v2371_v20 = vpop.eup %2370 }
 0x947   :  { %1067 = vrot.lane.b32.xlu0 %v2371_v20, %s2476_s4  ;;  %v2373_v24 = vpop.eup %2372 }
 0x948   :  { %v1055_v26 = vadd.f32 1.0, %v2373_v24 }
 0x94a   :  { %2374 = vrcp.f32 %v1055_v26 }
 0x954   :  { %v2375_v28 = vpop.eup %2374 }
 0x9b9   :  { %v1068_v29 = vpop.permute.xlu0 %1067 }
 0x9ba   :  { %v2804_v30 = vmul.f32 %v2375_v28, %v1068_v29 }
 0x9bc   :  { %1072 = vst.msk [vmem:[#allocation4 + $0x8] sm:$0x3] %vm519_vm1, %v2804_v30  ;;  %2062 = vmatmul.mubr.msk.f32.vlgmr.msra.gmra.mrb[8].mxu1 %vm399_vm2, %v2804_v30 }
 0x9bd   :  { %2263 = vmatpush1.bf16.msra.mxu1 %v2631_v51  ;;  %1432 = vmatprep.mubr.f32.mxu1 %v2474_v8 }
 0x9be   :  { %2265 = vmatprep.subr.bf16.mxu1 %v2635_v55 }
 0x9c1   :  { %2267 = vmatpush1.bf16.msra.mxu1 %v2654_v62 }
 0x9c2   :  { %2269 = vmatprep.subr.bf16.mxu1 %v2658_v63 }
 0x9c5   :  { %2271 = vmatpush1.bf16.msra.mxu1 %v2676_v4 }
 0x9c6   :  { %2273 = vmatprep.subr.bf16.mxu1 %v2680_v5 }
 0x9c9   :  { %2275 = vmatpush1.bf16.msra.mxu1 %v2693_v9 }
 0xa8f   :  { %v1159_v32 = vpop.f32.mrb[8].mxu1 }
 0xa90   :  { %v1161_v33 = vpop.f32.mrb[9].mxu1 }
 0xa91   :  { %v1166_v35 = vcombine.low %v1159_v32, %v1161_v33  ;;  %v1363_v32 = vld [vmem:[#allocation2 + $0x1c] sm:$0xf] }
 0xa92   :  { %v1365_v36 = vadd.f32 %v1364_v34, %v1363_v32 }
 0xa93   :  { %v1173_v51 = vrot.slane %v1166_v35, %v2588_v31 }
 0xa95   :  { %v1175_v38 = vadd.f32 %v1173_v51, %v1090_v37 }
 0xa97   :  { %1186 = vrot.lane.b32.xlu0 %v1175_v38, %s2476_s4  ;;  %v2063_v55 = vmul.f32 -1.442695, %v1175_v38  ;;  %v1183_v62 = vrot.slane %v1175_v38, 2  ;;  %v1080_v38 = vrot.slane %v2804_v30, %v2588_v31 }
 0xa99   :  { %2376 = vpow2.f32 %v2063_v55 }
 0xa9a   :  { %2378 = vtanh.f32 %v1183_v62 }
 0xaa3   :  { %v2377_v63 = vpop.eup %2376 }
 0xaa4   :  { %v1179_v4 = vadd.f32 1.0, %v2377_v63  ;;  %v2379_v5 = vpop.eup %2378  ;;  %v528_v63 = vrot.slane %v2729_v25, %v2588_v31 }
 0xaa6   :  { %2380 = vrcp.f32 %v1179_v4 }
 0xab0   :  { %v2381_v9 = vpop.eup %2380 }
 0xab1   :  { %v1197_v39 = vmul.f32 %v2381_v9, %v2379_v5  ;;  %v1196_v40 = vmul.f32 %v2381_v9, %v1064_v19  ;;  %v804_v9 = vrot.slane %v2767_v27, %v2588_v31 }
 0xab3   :  { %1199 = vrot.lane.b32.xlu1 %v1197_v39, %s2476_s4 }
 0xb09   :  { %v1187_v44 = vpop.permute.xlu0 %1186 }
 0xb0a   :  { %v1188_v45 = vrot.slane %v1187_v44, 2 }
 0xb0c   :  { %v2064_v46 = vmul.f32 -1.442695, %v1188_v45 }
 0xb25   :  { %v1200_v41 = vpop.permute.xlu1 %1199 }
 0xb26   :  { %v1202_v42 = vadd.f32 %v1200_v41, %v1196_v40 }
 0xb28   :  { %2382 = vtanh.f32 %v1202_v42 }
 0xb29   :  { %2384 = vpow2.f32 %v2064_v46 }
 0xb32   :  { %v2383_v43 = vpop.eup %2382 }
 0xb33   :  { %1205 = vrot.lane.b32.xlu1 %v2383_v43, %s2476_s4  ;;  %v2385_v47 = vpop.eup %2384 }
 0xb34   :  { %v1193_v48 = vadd.f32 1.0, %v2385_v47 }
 0xb36   :  { %2386 = vrcp.f32 %v1193_v48 }
 0xb40   :  { %v2387_v49 = vpop.eup %2386 }
 0xba5   :  { %v1206_v50 = vpop.permute.xlu1 %1205 }
 0xba6   :  { %v2822_v52 = vmul.f32 %v2387_v49, %v1206_v50  ;;  %v666_v49 = vrot.slane %v2748_v56, %v2588_v31  ;;  %v942_v56 = vrot.slane %v2786_v58, %v2588_v31 }
 0xba8   :  { %1210 = vst.msk [vmem:[#allocation4 + $0xa] sm:$0x3] %vm519_vm1, %v2822_v52  ;;  %2065 = vmatmul.mubr.msk.f32.vlgmr.msra.gmra.mrb[10].mxu0 %vm399_vm2, %v2822_v52  ;;  %v1218_v48 = vrot.slane %v2822_v52, %v2588_v31 }
 0xc7b   :  { %v1297_v53 = vpop.f32.mrb[10].mxu0 }
 0xc7c   :  { %v1299_v54 = vpop.f32.mrb[11].mxu0 }
 0xc7d   :  { %v1304_v59 = vcombine.low %v1297_v53, %v1299_v54 }
 0xc7f   :  { %v1311_v61 = vrot.slane %v1304_v59, %v2588_v31 }
 0xc81   :  { %v1313_v1 = vadd.f32 %v1311_v61, %v1228_v0 }
 0xc83   :  { %1324 = vrot.lane.b32.xlu1 %v1313_v1, %s2476_s4  ;;  %v2066_v2 = vmul.f32 -1.442695, %v1313_v1  ;;  %v1321_v3 = vrot.slane %v1313_v1, 2 }
 0xc85   :  { %2388 = vpow2.f32 %v2066_v2 }
 0xc86   :  { %2390 = vtanh.f32 %v1321_v3 }
 0xc8f   :  { %v2389_v6 = vpop.eup %2388 }
 0xc90   :  { %v1317_v7 = vadd.f32 1.0, %v2389_v6  ;;  %v2391_v10 = vpop.eup %2390 }
 0xc92   :  { %2392 = vrcp.f32 %v1317_v7 }
 0xc9c   :  { %v2393_v11 = vpop.eup %2392 }
 0xc9d   :  { %v1335_v12 = vmul.f32 %v2393_v11, %v2391_v10  ;;  %v1334_v13 = vmul.f32 %v2393_v11, %v1202_v42 }
 0xc9f   :  { %1337 = vrot.lane.b32.xlu0 %v1335_v12, %s2476_s4  ;;  %v1562_v12 = vld [vmem:[%s3025_s5] sm:$0xff] }
 0xcf5   :  { %v1325_v18 = vpop.permute.xlu1 %1324 }
 0xcf6   :  { %v1326_v19 = vrot.slane %v1325_v18, 2  ;;  %v1565_v18 = vld [vmem:[%s3025_s5 + $0x18] sm:$0xff] }
 0xcf8   :  { %v2067_v20 = vmul.f32 -1.442695, %v1326_v19 }
 0xd11   :  { %v1338_v14 = vpop.permute.xlu0 %1337 }
 0xd12   :  { %v1340_v15 = vadd.f32 %v1338_v14, %v1334_v13  ;;  %v1563_v13 = vld [vmem:[%s3025_s5 + $0x8] sm:$0xff] }
 0xd13   :  { %v2276_v14 = vpack.c.bf16 %v1563_v13, %v1562_v12 }
 0xd14   :  { %2394 = vtanh.f32 %v1340_v15 }
 0xd15   :  { %2396 = vpow2.f32 %v2067_v20  ;;  %2277 = vmatprep.subr.bf16.mxu0 %v2276_v14 }
 0xd16   :  { %2279 = vmatpush3.bf16.msra.mxu0 %v2276_v14 }
 0xd1e   :  { %v2395_v17 = vpop.eup %2394 }
 0xd1f   :  { %1343 = vrot.lane.b32.xlu0 %v2395_v17, %s2476_s4  ;;  %v2397_v21 = vpop.eup %2396  ;;  %v1564_v17 = vld [vmem:[%s3025_s5 + $0x10] sm:$0xff] }
 0xd20   :  { %v1331_v22 = vadd.f32 1.0, %v2397_v21  ;;  %v2280_v19 = vpack.c.bf16 %v1565_v18, %v1564_v17  ;;  %v1566_v21 = vld [vmem:[%s3025_s5 + $0x20] sm:$0xff] }
 0xd22   :  { %2398 = vrcp.f32 %v1331_v22  ;;  %2281 = vmatprep.subr.bf16.mxu0 %v2280_v19  ;;  %v1567_v22 = vld [vmem:[%s3025_s5 + $0x28] sm:$0xff] }
 0xd23   :  { %2283 = vmatpush3.bf16.msra.mxu0 %v2280_v19 }
 0xd2c   :  { %v2399_v23 = vpop.eup %2398 }
 0xd91   :  { %v1344_v24 = vpop.permute.xlu0 %1343 }
 0xd92   :  { %v1346_v26 = vmul.f32 %v2399_v23, %v1344_v24  ;;  %v2284_v23 = vpack.c.bf16 %v1567_v22, %v1566_v21 }
 0xd94   :  { %1348 = vst.msk [vmem:[#allocation4 + $0xc] sm:$0x3] %vm519_vm1, %v1346_v26  ;;  %2068 = vmatmul.mubr.msk.f32.vlgmr.msra.gmra.mrb[10].mxu1 %vm399_vm2, %v1346_v26  ;;  %v1356_v55 = vrot.slane %v1346_v26, %v2588_v31  ;;  %2285 = vmatprep.subr.bf16.mxu0 %v2284_v23  ;;  %v1568_v26 = vld [vmem:[%s3025_s5 + $0x30] sm:$0xff] }
 0xd95   :  { %2287 = vmatpush3.bf16.msra.mxu0 %v2284_v23  ;;  %2129 = vmatprep.mubr.msk.f32.mxu1 %vm2481_vm4, %v2474_v8 }
 0xe67   :  { %v1434_v28 = vpop.f32.mrb[10].mxu1 }
 0xe68   :  { %v1436_v29 = vpop.f32.mrb[11].mxu1 }
 0xe69   :  { %v1441_v33 = vcombine.low %v1434_v28, %v1436_v29  ;;  %v1569_v28 = vld [vmem:[%s3025_s5 + $0x38] sm:$0xff] }
 0xe6a   :  { %v2288_v29 = vpack.c.bf16 %v1569_v28, %v1568_v26 }
 0xe6b   :  { %v1448_v35 = vrot.slane %v1441_v33, %v2588_v31 }
 0xe6c   :  { %2289 = vmatprep.subr.bf16.mxu0 %v2288_v29 }
 0xe6d   :  { %v1450_v51 = vadd.f32 %v1448_v35, %v1365_v36  ;;  %2291 = vmatpush3.bf16.msra.mxu0 %v2288_v29  ;;  %v1501_v36 = vld [vmem:[#allocation4 + $0x6] sm:$0x3] }
 0xe6f   :  { %1461 = vrot.lane.b32.xlu0 %v1450_v51, %s2476_s4  ;;  %v2069_v37 = vmul.f32 -1.442695, %v1450_v51  ;;  %v1458_v62 = vrot.slane %v1450_v51, 2  ;;  %v1500_v51 = vld [vmem:[#allocation4 + $0x4] sm:$0x3] }
 0xe71   :  { %2400 = vpow2.f32 %v2069_v37 }
 0xe72   :  { %2402 = vtanh.f32 %v1458_v62 }
 0xe73   :  { %1081 = vrot.lane.b32.xlu0 %v1080_v38, %s2477_s15 }
 0xe77   :  { %1357 = vrot.lane.b32.xlu0 %v1356_v55, %s2477_s15  ;;  %v1499_v55 = vld [vmem:[#allocation4 + $0x2] sm:$0x3] }
 0xe7b   :  { %v2401_v4 = vpop.eup %2400  ;;  %529 = vrot.lane.b32.xlu0 %v528_v63, %s2477_s15 }
 0xe7c   :  { %v1454_v5 = vadd.f32 1.0, %v2401_v4  ;;  %v2403_v30 = vpop.eup %2402  ;;  %v1502_v4 = vld [vmem:[#allocation4 + $0x8] sm:$0x3] }
 0xe7e   :  { %2404 = vrcp.f32 %v1454_v5 }
 0xe7f   :  { %805 = vrot.lane.b32.xlu0 %v804_v9, %s2477_s15 }
 0xe88   :  { %v2405_v39 = vpop.eup %2404 }
 0xe89   :  { %v1472_v40 = vmul.f32 %v2405_v39, %v2403_v30  ;;  %v1471_v27 = vmul.f32 %v2405_v39, %v1340_v15  ;;  %v1503_v30 = vld [vmem:[#allocation4 + $0xa] sm:$0x3]  ;;  %v1498_v39 = vld [vmem:[#allocation4] sm:$0x3] }
 0xe8b   :  { %1474 = vrot.lane.b32.xlu1 %v1472_v40, %s2476_s4 }
 0xee1   :  { %v1462_v41 = vpop.permute.xlu0 %1461 }
 0xee2   :  { %v1463_v50 = vrot.slane %v1462_v41, 2 }
 0xee4   :  { %v2070_v53 = vmul.f32 -1.442695, %v1463_v50 }
 0xee5   :  { %v1082_v42 = vpop.permute.xlu0 %1081 }
 0xee6   :  { %1085 = vst.msk [vmem:[#allocation5 + $0x6] sm:$0x3] %vm519_vm1, %v1082_v42 }
 0xee9   :  { %v1358_v25 = vpop.permute.xlu0 %1357 }
 0xeea   :  { %1361 = vst.msk [vmem:[#allocation5 + $0x2] sm:$0x3] %vm519_vm1, %v1358_v25 }
 0xeed   :  { %v530_v43 = vpop.permute.xlu0 %529  ;;  %v1509_v6 = vld [vmem:[#allocation5 + $0x6] sm:$0x3] }
 0xeee   :  { %533 = vst.msk [vmem:[#allocation5 + $0xe] sm:$0x3] %vm519_vm1, %v530_v43 }
 0xef1   :  { %v806_v44 = vpop.permute.xlu0 %805  ;;  %v1507_v3 = vld [vmem:[#allocation5 + $0x2] sm:$0x3] }
 0xef2   :  { %809 = vst.msk [vmem:[#allocation5 + $0xa] sm:$0x3] %vm519_vm1, %v806_v44  ;;  %v1504_v44 = vld [vmem:[#allocation4 + $0xc] sm:$0x3] }
 0xef5   :  { %v1513_v10 = vld [vmem:[#allocation5 + $0xe] sm:$0x3] }
 0xef9   :  { %v1511_v7 = vld [vmem:[#allocation5 + $0xa] sm:$0x3] }
 0xefd   :  { %v1475_v45 = vpop.permute.xlu1 %1474 }
 0xefe   :  { %v1477_v46 = vadd.f32 %v1475_v45, %v1471_v27 }
 0xf00   :  { %2406 = vtanh.f32 %v1477_v46 }
 0xf01   :  { %2408 = vpow2.f32 %v2070_v53 }
 0xf0a   :  { %v2407_v47 = vpop.eup %2406 }
 0xf0b   :  { %1480 = vrot.lane.b32.xlu1 %v2407_v47, %s2476_s4  ;;  %v2409_v54 = vpop.eup %2408 }
 0xf0c   :  { %v1468_v57 = vadd.f32 1.0, %v2409_v54 }
 0xf0e   :  { %2410 = vrcp.f32 %v1468_v57 }
 0xf0f   :  { %1219 = vrot.lane.b32.xlu1 %v1218_v48, %s2477_s15 }
 0xf13   :  { %667 = vrot.lane.b32.xlu1 %v666_v49, %s2477_s15 }
 0xf18   :  { %v2411_v59 = vpop.eup %2410 }
 0xf7d   :  { %v1481_v60 = vpop.permute.xlu1 %1480 }
 0xf7e   :  { %v1483_v61 = vmul.f32 %v2411_v59, %v1481_v60 }
 0xf80   :  { %1485 = vst.msk [vmem:[#allocation4 + $0xe] sm:$0x3] %vm519_vm1, %v1483_v61  ;;  %v1493_v52 = vrot.slane %v1483_v61, %v2588_v31 }
 0xf81   :  { %v1220_v0 = vpop.permute.xlu1 %1219 }
 0xf82   :  { %1223 = vst.msk [vmem:[#allocation5 + $0x4] sm:$0x3] %vm519_vm1, %v1220_v0  ;;  %1494 = vrot.lane.b32.xlu1 %v1493_v52, %s2477_s15 }
 0xf85   :  { %v668_v1 = vpop.permute.xlu1 %667 }
 0xf86   :  { %671 = vst.msk [vmem:[#allocation5 + $0xc] sm:$0x3] %vm519_vm1, %v668_v1  ;;  %943 = vrot.lane.b32.xlu1 %v942_v56, %s2477_s15 }
 0xf87   :  { %v1505_v42 = vld [vmem:[#allocation4 + $0xe] sm:$0x3] }
 0xf89   :  { %v1508_v2 = vld [vmem:[#allocation5 + $0x4] sm:$0x3] }
 0xf8a   :  { %1526 = vrot.lane.b32.xlu0 %v1508_v2, %s2478_s16  ;;  %1524 = vrot.lane.b32.xlu1 %v1507_v3, %s2478_s16 }
 0xf8d   :  { %v1512_v24 = vld [vmem:[#allocation5 + $0xc] sm:$0x3] }
 0xf8e   :  { %1528 = vrot.lane.b32.xlu1 %v1509_v6, %s2478_s16 }
 0xf92   :  { %1532 = vrot.lane.b32.xlu1 %v1511_v7, %s2478_s16  ;;  %v2479_v7 = vmov 0  }
 0xf93   :  { %2315 = vset.pattern.permute.xlu1 %v2479_v7  ;;  %2314 = vset.pattern.permute.xlu0 %v2479_v7 }
 0xf96   :  { %1536 = vrot.lane.b32.xlu1 %v1513_v10, %s2478_s16 }
 0xff4   :  { %v1495_v58 = vpop.permute.xlu1 %1494 }
 0xff5   :  { %1497 = vst.msk [vmem:[#allocation5] sm:$0x3] %vm519_vm1, %v1495_v58 }
 0xff8   :  { %v944_v11 = vpop.permute.xlu1 %943 }
 0xff9   :  { %947 = vst.msk [vmem:[#allocation5 + $0x8] sm:$0x3] %vm519_vm1, %v944_v11 }
 0xffc   :  { %v1506_v20 = vld [vmem:[#allocation5] sm:$0x3]  ;;  %v1525_v32 = vpop.permute.xlu1 %1524  ;;  %v1527_v34 = vpop.permute.xlu0 %1526 }
 0xffd   :  { %v2905_v38 = vsel %vm124_vm0, %v1500_v51, %v1527_v34  ;;  %v2908_v63 = vsel %vm124_vm0, %v1499_v55, %v1525_v32 }
0x1000   :  { %v1510_v15 = vld [vmem:[#allocation5 + $0x8] sm:$0x3]  ;;  %v1529_v33 = vpop.permute.xlu1 %1528 }
0x1001   :  { %1530 = vrot.lane.b32.xlu0 %v1510_v15, %s2478_s16  ;;  %v2902_v37 = vsel %vm124_vm0, %v1501_v36, %v1529_v33 }
0x1002   :  { %2412 = vtanh.f32 %v2902_v37 }
0x1003   :  { %2414 = vtanh.f32 %v2905_v38 }
0x1004   :  { %v1533_v35 = vpop.permute.xlu1 %1532  ;;  %2416 = vtanh.f32 %v2908_v63 }
0x1005   :  { %1522 = vrot.lane.b32.xlu0 %v1506_v20, %s2478_s16  ;;  %v2917_v41 = vsel %vm124_vm0, %v1503_v30, %v1533_v35 }
0x1008   :  { %v1537_v9 = vpop.permute.xlu1 %1536 }
0x1009   :  { %1534 = vrot.lane.b32.xlu0 %v1512_v24, %s2478_s16  ;;  %v2924_v43 = vsel %vm124_vm0, %v1505_v42, %v1537_v9 }
0x100c   :  { %v2413_v46 = vpop.eup %2412 }
0x100d   :  { %v2415_v47 = vpop.eup %2414 }
0x100e   :  { %v2417_v48 = vpop.eup %2416  ;;  %v1579_v50 = vcombine.low %v2415_v47, %v2413_v46 }
0x1010   :  { %v1593_v52 = vrot.slane %v1579_v50, %v2588_v31 }
0x1073   :  { %v1531_v62 = vpop.permute.xlu0 %1530 }
0x1074   :  { %v2912_v5 = vsel %vm124_vm0, %v1502_v4, %v1531_v62 }
0x1075   :  { %2418 = vtanh.f32 %v2912_v5 }
0x1077   :  { %v1523_v40 = vpop.permute.xlu0 %1522 }
0x1078   :  { %v2921_v25 = vsel %vm124_vm0, %v1498_v39, %v1523_v40 }
0x1079   :  { %2420 = vtanh.f32 %v2921_v25 }
0x107a   :  { %2422 = vtanh.f32 %v2917_v41 }
0x107b   :  { %v1535_v27 = vpop.permute.xlu0 %1534  ;;  %2424 = vtanh.f32 %v2924_v43 }
0x107c   :  { %v2930_v45 = vsel %vm124_vm0, %v1504_v44, %v1535_v27 }
0x107d   :  { %2426 = vtanh.f32 %v2930_v45 }
0x107f   :  { %v2419_v49 = vpop.eup %2418 }
0x1083   :  { %v2421_v53 = vpop.eup %2420 }
0x1084   :  { %v1578_v54 = vcombine.low %v2421_v53, %v2417_v48  ;;  %v2423_v57 = vpop.eup %2422 }
0x1085   :  { %v2425_v59 = vpop.eup %2424  ;;  %v1595_v60 = vcombine.low %v2419_v49, %v2423_v57 }
0x1086   :  { %v1586_v61 = vrot.slane %v1578_v54, %v2588_v31 }
0x1087   :  { %v2427_v0 = vpop.eup %2426  ;;  %v1603_v2 = vrot.slane %v1595_v60, %v2588_v31 }
0x1088   :  { %v1596_v56 = vcombine.low %v2427_v0, %v2425_v59  ;;  %v1594_v1 = vcombine.low %v1586_v61, %v1593_v52 }
0x108a   :  { %2110 = vmatprep.mubr.msk.f32.mxu0 %vm399_vm2, %v1594_v1  ;;  %v1610_v3 = vrot.slane %v1596_v56, %v2588_v31 }
0x108c   :  { %v1611_v6 = vcombine.low %v1603_v2, %v1610_v3 }
0x108e   :  { %2111 = vmatmul.mubr.msk.f32.vlgmr.msra.gmra.mrb[12].mxu0 %vm399_vm2, %v1611_v6 }
0x1161   :  { %v2112_v10 = vpop.f32.mrb[12].mxu0 }
0x1162   :  { %v1710_v58 = vcombine.high %v2112_v10, %v2112_v10  ;;  %v1717_v11 = vrot.slane %v2112_v10, %v2588_v31  ;;  %v1682_v12 = vpop.f32.mrb[13].mxu0 }
0x1163   :  { %v1693_v13 = vcombine.high %v1682_v12, %v1682_v12  ;;  %v1700_v14 = vrot.slane %v1682_v12, %v2588_v31 }
0x1164   :  { %v1724_v15 = vrot.slane %v1710_v58, %v2588_v31  ;;  %v1725_v17 = vcombine.high %v1717_v11, %v1717_v11  ;;  %v1740_v18 = vsel %vm1735_vm3, %v1717_v11, -inf }
0x1165   :  { %v1707_v19 = vrot.slane %v1693_v13, %v2588_v31  ;;  %v1708_v20 = vcombine.high %v1700_v14, %v1700_v14  ;;  %v1736_v21 = vsel %vm1735_vm3, %v1700_v14, -inf }
0x1166   :  { %v1726_v22 = vcombine.high %v1724_v15, %v1724_v15  ;;  %v1742_v23 = vsel %vm1735_vm3, %v1725_v17, -inf  ;;  %v1744_v24 = vsel %vm1735_vm3, %v1724_v15, -inf  ;;  %v1741_v26 = vmax.f32 %v1736_v21, %v1740_v18 }
0x1167   :  { %v1709_v28 = vcombine.high %v1707_v19, %v1707_v19  ;;  %v1737_v29 = vsel %vm1735_vm3, %v1708_v20, -inf  ;;  %v1738_v32 = vsel %vm1735_vm3, %v1707_v19, -inf }
0x1168   :  { %v1746_v33 = vsel %vm1735_vm3, %v1726_v22, -inf  ;;  %v1743_v34 = vmax.f32 %v1737_v29, %v1742_v23  ;;  %v1745_v35 = vmax.f32 %v1738_v32, %v1744_v24 }
0x1169   :  { %v1739_v31 = vsel %vm1735_vm3, %v1709_v28, -inf }
0x116a   :  { %v1747_v36 = vmax.f32 %v1739_v31, %v1746_v33  ;;  %v1748_v51 = vmax.f32 %v1741_v26, %v1743_v34  ;;  %v1921_v31 = vld [vmem:[%s3026_s6 + $0x8] sm:$0xff] }
0x116c   :  { %v1749_v55 = vmax.f32 %v1745_v35, %v1747_v36  ;;  %v1920_v35 = vld [vmem:[%s3026_s6] sm:$0xff] }
0x116d   :  { %v2293_v36 = vpack.c.bf16 %v1921_v31, %v1920_v35 }
0x116e   :  { %v1750_v62 = vmax.f32 %v1748_v51, %v1749_v55  ;;  %v2480_v51 = vmov 0.0|0.0   ;;  %v1922_v55 = vld [vmem:[%s3026_s6 + $0x10] sm:$0xff] }
0x116f   :  { %2292 = vmatprep.subr.bf16.mxu1 %v2480_v51 }
0x1170   :  { %v1751_v4 = vsub.f32 %v1700_v14, %v1750_v62  ;;  %v1752_v9 = vsub.f32 %v1708_v20, %v1750_v62  ;;  %v1753_v30 = vsub.f32 %v1707_v19, %v1750_v62  ;;  %v1754_v39 = vsub.f32 %v1709_v28, %v1750_v62  ;;  %2294 = vmatpush3.bf16.msra.mxu1 %v2293_v36 }
0x1171   :  { %v1755_v40 = vsub.f32 %v1717_v11, %v1750_v62  ;;  %v1756_v42 = vsub.f32 %v1725_v17, %v1750_v62  ;;  %v1757_v44 = vsub.f32 %v1724_v15, %v1750_v62  ;;  %v1758_v27 = vsub.f32 %v1726_v22, %v1750_v62  ;;  %2295 = vmatprep.subr.bf16.mxu1 %v2480_v51  ;;  %v1923_v62 = vld [vmem:[%s3026_s6 + $0x18] sm:$0xff] }
0x1172   :  { %v1759_v46 = vmul.f32 1.442695, %v1751_v4  ;;  %v1761_v47 = vmul.f32 1.442695, %v1752_v9  ;;  %v1763_v48 = vmul.f32 1.442695, %v1753_v30  ;;  %v2296_v4 = vpack.c.bf16 %v1923_v62, %v1922_v55 }
0x1173   :  { %v1765_v49 = vmul.f32 1.442695, %v1754_v39  ;;  %v1767_v50 = vmul.f32 1.442695, %v1755_v40  ;;  %v1769_v53 = vmul.f32 1.442695, %v1756_v42 }
0x1174   :  { %2428 = vpow2.f32 %v1759_v46  ;;  %v1771_v54 = vmul.f32 1.442695, %v1757_v44  ;;  %v1773_v57 = vmul.f32 1.442695, %v1758_v27  ;;  %2297 = vmatpush3.bf16.msra.mxu1 %v2296_v4  ;;  %v1924_v9 = vld [vmem:[%s3026_s6 + $0x20] sm:$0xff]  ;;  %v1925_v30 = vld [vmem:[%s3026_s6 + $0x28] sm:$0xff] }
0x1175   :  { %2430 = vpow2.f32 %v1761_v47  ;;  %2298 = vmatprep.subr.bf16.mxu1 %v2480_v51  ;;  %v2299_v39 = vpack.c.bf16 %v1925_v30, %v1924_v9  ;;  %v1926_v40 = vld [vmem:[%s3026_s6 + $0x30] sm:$0xff]  ;;  %v1927_v42 = vld [vmem:[%s3026_s6 + $0x38] sm:$0xff]  ;;  %v2482_v27 = vmov 269488144  }
0x1176   :  { %2432 = vpow2.f32 %v1763_v48  ;;  %v2302_v44 = vpack.c.bf16 %v1927_v42, %v1926_v40  ;;  %v1805_v46 = vunpack.c.l.s4 %v2482_v27 }
0x1177   :  { %2434 = vpow2.f32 %v1765_v49 }
0x1178   :  { %2436 = vpow2.f32 %v1767_v50  ;;  %2300 = vmatpush3.bf16.msra.mxu1 %v2299_v39  ;;  %v1806_v47 = vunpack.c.0.s8 %v1805_v46 }
0x1179   :  { %2438 = vpow2.f32 %v1769_v53  ;;  %2301 = vmatprep.subr.bf16.mxu1 %v2480_v51 }
0x117a   :  { %2440 = vpow2.f32 %v1771_v54  ;;  %v1809_v48 = vsub.s32 %v1806_v47, %v2558_v16 }
0x117b   :  { %2442 = vpow2.f32 %v1773_v57 }
0x117c   :  { %2303 = vmatpush3.bf16.msra.mxu1 %v2302_v44 }
0x117e   :  { %v2429_v59 = vpop.eup %2428 }
0x117f   :  { %v2431_v60 = vpop.eup %2430  ;;  %v1775_v61 = vsel %vm1735_vm3, %v2429_v59, 0.0 }
0x1180   :  { %v2433_v52 = vpop.eup %2432  ;;  %v1776_v0 = vsel %vm1735_vm3, %v2431_v60, 0.0 }
0x1181   :  { %v2435_v56 = vpop.eup %2434  ;;  %v1777_v1 = vadd.f32 %v1776_v0, %v1775_v61  ;;  %v1778_v2 = vsel %vm1735_vm3, %v2433_v52, 0.0 }
0x1182   :  { %v2437_v3 = vpop.eup %2436  ;;  %v1780_v7 = vsel %vm1735_vm3, %v2435_v56, 0.0 }
0x1183   :  { %v1779_v6 = vadd.f32 %v1778_v2, %v1777_v1  ;;  %v2439_v10 = vpop.eup %2438  ;;  %v1782_v11 = vsel %vm1735_vm3, %v2437_v3, 0.0 }
0x1184   :  { %v2441_v12 = vpop.eup %2440  ;;  %v1784_v14 = vsel %vm1735_vm3, %v2439_v10, 0.0 }
0x1185   :  { %v1781_v58 = vadd.f32 %v1780_v7, %v1779_v6  ;;  %v2443_v15 = vpop.eup %2442  ;;  %v1786_v18 = vsel %vm1735_vm3, %v2441_v12, 0.0 }
0x1186   :  { %v1788_v20 = vsel %vm1735_vm3, %v2443_v15, 0.0 }
0x1187   :  { %v1783_v13 = vadd.f32 %v1782_v11, %v1781_v58 }
0x1189   :  { %v1785_v17 = vadd.f32 %v1784_v14, %v1783_v13 }
0x118b   :  { %v1787_v19 = vadd.f32 %v1786_v18, %v1785_v17 }
0x118d   :  { %v1789_v21 = vadd.f32 %v1788_v20, %v1787_v19 }
0x118f   :  { %2444 = vrcp.f32 %v1789_v21 }
0x1199   :  { %v2445_v22 = vpop.eup %2444 }
0x119a   :  { %v1792_v23 = vmul.f32 %v2445_v22, %v2431_v60  ;;  %v1791_v24 = vmul.f32 %v2445_v22, %v2429_v59  ;;  %v1793_v26 = vmul.f32 %v2445_v22, %v2433_v52  ;;  %v1794_v28 = vmul.f32 %v2445_v22, %v2435_v56 }
0x119b   :  { %v1795_v29 = vmul.f32 %v2445_v22, %v2437_v3  ;;  %v1796_v32 = vmul.f32 %v2445_v22, %v2439_v10  ;;  %v1797_v33 = vmul.f32 %v2445_v22, %v2441_v12  ;;  %v1798_v34 = vmul.f32 %v2445_v22, %v2443_v15 }
0x119c   :  { %1813 = vperm.xlu1 %2315, %v1792_v23   ;;  %1801 = vperm.xlu0 %2314, %v1791_v24  }
0x11a0   :  { %1825 = vperm.xlu1 %2315, %v1793_v26   ;;  %1837 = vperm.xlu0 %2314, %v1794_v28   ;;  %v2073_v28 = vld [vmem:[%s3027_s7] ss:$0 sm:$0xff]  ;;  %s2028_s7 = sshll.u32 %s2483_s20, 4  ;;  %s2029_s7 = int_to_ptr.vmem [resolvable:$true] %s2028_s7 }
0x11a1   :  { %s2450_s2 = scalar_lea.vmem %s2029_s7, 32  ;;  %p2455_p1 = scmp.lt.s32.totalorder %s2029_s7, %s2029_s7 }
0x11a2   :  { %p2451_p0 = scmp.ne.s32.totalorder %s2029_s7, %s2450_s2  ;;  %p2456_p2 = scmp.lt.s32.totalorder %s2450_s2, %s2450_s2 }
0x11a4   :  { %1849 = vperm.xlu1 %2315, %v1795_v29   ;;  %1861 = vperm.xlu0 %2314, %v1796_v32   ;;  %p2457_p3 = por %p2456_p2, %p2455_p1 }
0x11a6   :  { %p2458_p4 = pnand %p2457_p3, %p2451_p0 }
0x11a8   :  { %1873 = vperm.xlu1 %2315, %v1797_v33   ;;  %1885 = vperm.xlu0 %2314, %v1798_v34  }
0x121b   :  { %v1814_v49 = vpop.permute.xlu1 %1813  ;;  %v1802_v50 = vpop.permute.xlu0 %1801 }
0x121c   :  { %v1822_v53 = vrot.slane %v1814_v49, %v1809_v48  ;;  %v1810_v54 = vrot.slane %v1802_v50, %v1809_v48 }
0x121e   :  { %v1896_v57 = vmul.f32 %v1822_v53, %v2908_v63  ;;  %v1895_v59 = vmul.f32 %v1810_v54, %v2921_v25 }
0x121f   :  { %v1826_v60 = vpop.permute.xlu1 %1825  ;;  %v1838_v61 = vpop.permute.xlu0 %1837 }
0x1220   :  { %v1905_v8 = vsel %vm1903_vm5, %v1896_v57, 0.0  ;;  %v1904_v52 = vsel %vm1903_vm5, %v1895_v59, 0.0  ;;  %v1834_v0 = vrot.slane %v1826_v60, %v1809_v48  ;;  %v1846_v56 = vrot.slane %v1838_v61, %v1809_v48 }
0x1221   :  { %v1906_v2 = vadd.f32 %v1905_v8, %v1904_v52 }
0x1222   :  { %v1897_v1 = vmul.f32 %v1834_v0, %v2905_v38  ;;  %v1898_v16 = vmul.f32 %v1846_v56, %v2902_v37 }
0x1223   :  { %v1850_v3 = vpop.permute.xlu1 %1849  ;;  %v1862_v6 = vpop.permute.xlu0 %1861 }
0x1224   :  { %v1907_v7 = vsel %vm1903_vm5, %v1897_v1, 0.0  ;;  %v1858_v63 = vrot.slane %v1850_v3, %v1809_v48  ;;  %v1870_v10 = vrot.slane %v1862_v6, %v1809_v48  ;;  %v1909_v58 = vsel %vm1903_vm5, %v1898_v16, 0.0 }
0x1225   :  { %v1908_v25 = vadd.f32 %v1907_v7, %v1906_v2 }
0x1226   :  { %v1899_v11 = vmul.f32 %v1858_v63, %v2912_v5  ;;  %v1900_v12 = vmul.f32 %v1870_v10, %v2917_v41 }
0x1227   :  { %v1910_v13 = vadd.f32 %v1909_v58, %v1908_v25  ;;  %v1874_v14 = vpop.permute.xlu1 %1873  ;;  %v1886_v15 = vpop.permute.xlu0 %1885 }
0x1228   :  { %v1911_v38 = vsel %vm1903_vm5, %v1899_v11, 0.0  ;;  %v1882_v37 = vrot.slane %v1874_v14, %v1809_v48  ;;  %v1894_v17 = vrot.slane %v1886_v15, %v1809_v48  ;;  %v1913_v19 = vsel %vm1903_vm5, %v1900_v12, 0.0 }
0x1229   :  { %v1912_v18 = vadd.f32 %v1911_v38, %v1910_v13 }
0x122a   :  { %v1901_v20 = vmul.f32 %v1882_v37, %v2930_v45  ;;  %v1902_v21 = vmul.f32 %v1894_v17, %v2924_v43 }
0x122b   :  { %v1914_v22 = vadd.f32 %v1913_v19, %v1912_v18 }
0x122c   :  { %v1915_v23 = vsel %vm1903_vm5, %v1901_v20, 0.0  ;;  %v1917_v41 = vsel %vm1903_vm5, %v1902_v21, 0.0 }
0x122d   :  { %v1916_v5 = vadd.f32 %v1915_v23, %v1914_v22 }
0x122f   :  { %v1918_v24 = vadd.f32 %v1917_v41, %v1916_v5 }
0x1231   :  { %v1919_v26 = vmax.f32 %v1918_v24, 0.0 }
0x1233   :  { %2130 = vmatmul.mubr.msk.f32.vlgmr.msra.gmra.mrb[12].mxu1 %vm399_vm2, %v1919_v26 }
0x1306   :  { %v2004_v29 = vpop.f32.mrb[12].mxu1 }
0x1307   :  { %v2005_v32 = vadd.f32 %v2073_v28, %v2004_v29  ;;  %v2131_v45 = vpop.f32.mrb[13].mxu1 }
0x1309   :  { %v2009_v43 = vsel %vm2008_vm6, %v2005_v32, -inf }
0x130a   :  { %2010 = vmax.xlane.f32.xlu1 %v2009_v43 }
0x1397   :  { %v2011_v33 = vpop.xlane.xlu1 %2010 }
0x1398   :  { %v2012_v34 = vsub.f32 %v2005_v32, %v2011_v33 }
0x139a   :  { %v2013_v35 = vmul.f32 1.442695, %v2012_v34 }
0x139c   :  { %2446 = vpow2.f32 %v2013_v35 }
0x13a6   :  { %v2447_v31 = vpop.eup %2446 }
0x13a7   :  { %v2015_v36 = vsel %vm2008_vm6, %v2447_v31, 0.0 }
0x13a8   :  { %2016 = vadd.xlane.f32.xlu0 %v2015_v36 }
0x1435   :  { %v2017_v51 = vpop.xlane.xlu0 %2016 }
0x1436   :  { %2448 = vlog2.f32 %v2017_v51 }
0x1440   :  { %v2449_v55 = vpop.eup %2448 }
0x1441   :  { %v2019_v62 = vmul.f32 0.6931472, %v2449_v55 }
0x1443   :  { %v2020_v4 = vsub.f32 %v2012_v34, %v2019_v62 }
0x1445   :  { %2021 = vst.msk [vmem:[#allocation6] sm:$0x3] %vm2008_vm6, %v2020_v4 }
0x1446   :  { %2461 = shalt.err (!%p2458_p4)
}
0x1447   :  { %s2462_s23 = scalar_lea.hbm %s3028_s8, 32 }
0x1448   :  { %p2463_p5 = scmp.ne.s32.totalorder %s3028_s8, %s2462_s23  ;;  %p2466_p6 = scmp.lt.u32.totalorder %s2462_s23, %s3028_s8 }
0x144a   :  { %p2468_p7 = pnand %p2466_p6, %p2463_p5 }
0x144c   :  { %2471 = shalt.err (!%p2468_p7)
}
0x144d   :  { %2031 = dma.vmem_to_hbm [thread:$0]  %s2029_s7, 32, %s3028_s8, [#allocation7]  }
0x144e   :  { %2472 = dma.done.wait [#allocation7], 32  }
0x144f   :  { %2473 = vsyncadd [#allocation7], 4294967264 }
0x1450   :  { %2035 = vsyncpa [#allocation7], 1 }

</bundles_post_ra>
